<compile_context>
chip_gen: v5e
topology: v5e:2x2
jax: 0.10.0
libtpu: 0.0.40
codegen_flags: <defaults>
</compile_context>

<pallas_src>
import functools
import numpy as np
import jax
import jax.numpy as jnp
from jax import lax
from jax.experimental import pallas as pl
from jax.experimental.pallas import tpu as pltpu


def _time_blocking(T, cap=1024):
    """Pick a time-block size TB (<= ~cap) and the padded track length T_pad = k*TB."""
    if T <= cap:
        return T, T
    nblk = -(-T // cap)                 # number of grid steps
    tb = -(-T // nblk)                  # even-ish split
    tb = ((tb + 7) // 8) * 8            # sublane-aligned block rows
    return tb, tb * nblk


def _block_diag(w):
    """(L, a, b) -> (L*a, L*b) block-diagonal matrix."""
    L, a, b = w.shape
    out = jnp.zeros((L * a, L * b), w.dtype)
    for i in range(L):
        out = out.at[i * a:(i + 1) * a, i * b:(i + 1) * b].set(w[i])
    return out


def _shifted_block_diag(w):
    """(L, a, b) -> (L*a, L*b); block (i, i+1) = w[i] (super-diagonal).
    So (ca1 @ out) segment j equals interLayer[j-1](ca1_{j-1}) for j >= 1."""
    L, a, b = w.shape
    out = jnp.zeros((L * a, L * b), w.dtype)
    for i in range(L - 1):
        out = out.at[i * a:(i + 1) * a, (i + 1) * b:(i + 2) * b].set(w[i])
    return out


def make_hpc_dv_kernel(*, ecnum, ca1num, loopnum, bs, tb, t_real, padded, unroll=8):
    """Builds the Pallas kernel body (all recurrent compute happens here)."""
    LE = loopnum * ecnum
    LC1 = loopnum * ca1num
    f32 = jnp.float32
    bf16 = jnp.bfloat16

    def kernel(cue_ref, t1_ref, ec3_init_ref, ec5_init_ref,
               wec3ca1_ref, ca1bias_ref, wfused_ref, ec5bias_ref,
               wca1act_ref, actbias_ref,
               ec3his_ref, ec5his_ref, ca1his_ref, act_ref,
               ec3_s, ec5_s):
        g = pl.program_id(0)

        # Initialize recurrent state from the "last" inputs on the first time block.
        @pl.when(g == 0)
        def _():
            ec3_s[...] = ec3_init_ref[...]
            ec5_s[...] = ec5_init_ref[...]

        # Hoist weight loads out of the inner time loop (grid-invariant, tiny).
        wec3ca1 = wec3ca1_ref[...]     # (LE, LC1)    bf16, block-diag, pre-scaled by 0.5
        wfused = wfused_ref[...]       # (LC1, 2*LE)  bf16, [10*ts*wca1ec5 | interW shifted]
        ca1bias = ca1bias_ref[...]     # (1, LC1)     f32
        ec5bias = ec5bias_ref[...]     # (1, LE)      f32

        def step(t, carry):
            ec3, ec5, ca1_prev = carry                  # (bs,LE), (bs,LE), (bs,LC1)
            t1 = t1_ref[pl.ds(t, 1), :]                 # (1, LC1) precomputed CA3->CA1 drive
            cue = cue_ref[t]                            # (bs, LE) cue (+ folded interLayer bias)

            # CA1 = relu(t1 * (1 + 3*sigmoid(ec3 @ W)) - bias); sigmoid via tanh on the EUP.
            z = jnp.dot(ec3.astype(bf16), wec3ca1, preferred_element_type=f32)
            ca1 = jnp.maximum(t1 * (2.5 + 1.5 * jnp.tanh(z)) - ca1bias, 0.0)

            # Single fused MXU op for both CA1-LHS matmuls: [ec5 delta | inter-loop ec3 input].
            fused = jnp.dot(ca1.astype(bf16), wfused, preferred_element_type=f32)  # (bs, 2*LE)

            # EC5: x + 10*ts*(ca1@W) + b, then 0.69 + 0.3*sigmoid(4*(x-0.3)) == 0.84+0.15*tanh(2x-0.6)
            ec5p = ec5 + fused[:, :LE] + ec5bias
            ec5 = 0.84 + 0.15 * jnp.tanh(2.0 * ec5p - 0.6)

            # EC3: segment 0 gets the cue, segment i>0 gets interLayer[i-1](ca1_{i-1}).
            ec3 = ec5 * ec3 + 0.6 * (cue + fused[:, LE:])

            # History of batch element 0: three lane-offset-0 stores (no concat / rotation).
            ec3his_ref[pl.ds(t, 1), :] = ec3[0:1, :]
            ec5his_ref[pl.ds(t, 1), :] = ec5[0:1, :]
            ca1his_ref[pl.ds(t, 1), :] = ca1[0:1, :]

            if padded:
                # Keep the last *real* CA1 for the actCell readout on padded tail steps.
                ca1 = jnp.where(g * tb + t < t_real, ca1, ca1_prev)
            return ec3, ec5, ca1

        init = (ec3_s[...], ec5_s[...], jnp.zeros((bs, LC1), f32))
        ec3, ec5, ca1 = lax.fori_loop(0, tb, step, init, unroll=min(unroll, tb))

        ec3_s[...] = ec3
        ec5_s[...] = ec5

        # Readout from the last loop's CA1, only on the final grid step.
        @pl.when(g == pl.num_programs(0) - 1)
        def _():
            act_ref[...] = jnp.dot(ca1[:, (loopnum - 1) * ca1num:], wca1act_ref[...],
                                   preferred_element_type=f32) + actbias_ref[...]

    return kernel


def hpc_dv_forward(cue_ec3input, ec3_last, ec5_last, ca1_last, params, cfg):
    """cue_ec3input: (bs, tracklength, ecnum); ec3/ec5_last: (loopnum, bs, ecnum);
    ca1_last: (loopnum, bs, ca1num) (overwritten before use in the reference module).
    Returns (actCell, ec3his, ec5his, ca1his) with PyTorch conventions."""
    del ca1_last
    bs, T, E = cue_ec3input.shape
    L, C1, C3, A = cfg["loopnum"], cfg["ca1num"], cfg["ca3num"], cfg["actnum"]
    ts, sigma = cfg["ts"], cfg["ca3sigma"]
    LE, LC1 = L * E, L * C1

    f32 = jnp.float32
    bf16 = jnp.bfloat16

    TB, T_pad = _time_blocking(T)
    grid = (T_pad // TB,)
    padded = (T_pad != T)

    # ---- precompute the position-only CA3->CA1 drive table (plain JAX, full precision) ----
    pos = jnp.arange(T, dtype=f32)[:, None]                               # (T, 1)
    centers = jnp.linspace(0.0, float(T), C3, dtype=f32)[None, :]         # (1, C3)
    ca3 = jnp.exp(-((centers - pos) ** 2) / (sigma ** 2) / 2.0)           # (T, C3)
    drive = jnp.einsum('tc,lcd->tld', ca3, params["wca3ca1"].astype(f32),
                       precision=lax.Precision.HIGHEST)                   # (T, L, C1)
    t1_tab = jax.nn.sigmoid(10.0 * (drive - 0.5)).reshape(T, LC1).astype(f32)
    t1_tab = jnp.pad(t1_tab, ((0, T_pad - T), (0, 0)))                    # (T_pad, LC1)

    # ---- pack per-loop weights; fold constants (0.5 for tanh-sigmoid, 10*ts) into them ----
    wec3ca1_blk = _block_diag(0.5 * params["wec3ca1"].astype(f32)).astype(bf16)      # (LE, LC1)
    wca1ec5_blk = _block_diag((10.0 * ts) * params["wca1ec5"].astype(f32))           # (LC1, LE)
    interw_shift = _shifted_block_diag(params["interW"].astype(f32))                 # (LC1, LE)
    w_fused = jnp.concatenate([wca1ec5_blk, interw_shift], axis=1).astype(bf16)      # (LC1, 2*LE)

    ca1bias_flat = params["ca1bias"].astype(f32).reshape(1, LC1)
    ec5bias_flat = params["ec5bias"].astype(f32).reshape(1, LE)
    interb_row = jnp.concatenate(
        [jnp.zeros((1, E), f32),
         params["interb"].astype(f32)[:L - 1].reshape(1, (L - 1) * E)], axis=1)      # (1, LE)

    # ---- time-major cue, padded so only loop 0 receives it; interLayer bias folded in ----
    cue_tm = jnp.transpose(cue_ec3input.astype(f32), (1, 0, 2))                      # (T, bs, E)
    cue_full = jnp.pad(cue_tm, ((0, T_pad - T), (0, 0), (0, LE - E)))                # (T_pad,bs,LE)
    cue_full = cue_full + interb_row[None, :, :]

    # ---- initial recurrent state, loop-major along lanes ----
    ec3_init = jnp.transpose(ec3_last.astype(f32), (1, 0, 2)).reshape(bs, LE)
    ec5_init = jnp.transpose(ec5_last.astype(f32), (1, 0, 2)).reshape(bs, LE)

    kernel = make_hpc_dv_kernel(ecnum=E, ca1num=C1, loopnum=L, bs=bs, tb=TB,
                                t_real=T, padded=padded)

    const = lambda shp: pl.BlockSpec(shp, lambda g: (0, 0))
    in_specs = [
        pl.BlockSpec((TB, bs, LE), lambda g: (g, 0, 0)),    # cue (+interb), time-blocked
        pl.BlockSpec((TB, LC1), lambda g: (g, 0)),          # t1 table (2-D, sublane-dense)
        const((bs, LE)),                                    # ec3 init
        const((bs, LE)),                                    # ec5 init
        const((LE, LC1)),                                   # 0.5*wec3ca1 block-diag (bf16)
        const((1, LC1)),                                    # ca1bias
        const((LC1, 2 * LE)),                               # fused [10ts*wca1ec5 | interW] (bf16)
        const((1, LE)),                                     # ec5bias
        const((C1, A)),                                     # wca1act
        const((1, A)),                                      # actbias
    ]
    out_specs = [
        pl.BlockSpec((TB, LE), lambda g: (g, 0)),           # ec3 history (batch row 0)
        pl.BlockSpec((TB, LE), lambda g: (g, 0)),           # ec5 history
        pl.BlockSpec((TB, LC1), lambda g: (g, 0)),          # ca1 history
        const((bs, A)),                                     # actCell (written on last step)
    ]
    out_shape = (
        jax.ShapeDtypeStruct((T_pad, LE), f32),
        jax.ShapeDtypeStruct((T_pad, LE), f32),
        jax.ShapeDtypeStruct((T_pad, LC1), f32),
        jax.ShapeDtypeStruct((bs, A), f32),
    )

    ec3h, ec5h, ca1h, act = pl.pallas_call(
        kernel,
        out_shape=out_shape,
        grid=grid,
        in_specs=in_specs,
        out_specs=out_specs,
        scratch_shapes=[
            pltpu.VMEM((bs, LE), f32),   # ec3 recurrent state (persists across grid steps)
            pltpu.VMEM((bs, LE), f32),   # ec5 recurrent state
        ],
        compiler_params=pltpu.CompilerParams(
            dimension_semantics=("arbitrary",)),
    )(cue_full, t1_tab, ec3_init, ec5_init,
      wec3ca1_blk, ca1bias_flat, w_fused, ec5bias_flat,
      params["wca1act"].astype(f32), params["actbias"].astype(f32))

    ec3his = ec3h[:T].reshape(T, L, E).transpose(1, 0, 2)
    ec5his = ec5h[:T].reshape(T, L, E).transpose(1, 0, 2)
    ca1his = ca1h[:T].reshape(T, L, C1).transpose(1, 0, 2)
    return act, ec3his, ec5his, ca1his


def reference_forward(cue, ec3_last, ec5_last, ca1_last, params, cfg):
    """Pure NumPy reference mirroring the PyTorch forward."""
    sig = lambda z: 1.0 / (1.0 + np.exp(-z))
    cue = np.asarray(cue, np.float32)
    ec3 = np.array(ec3_last, np.float32)
    ec5 = np.array(ec5_last, np.float32)
    ca1 = np.array(ca1_last, np.float32)
    p = {k: np.asarray(v, np.float32) for k, v in params.items()}
    T, L = cfg["tracklength"], cfg["loopnum"]
    ec3his = np.zeros((L, T, cfg["ecnum"]), np.float32)
    ec5his = np.zeros((L, T, cfg["ecnum"]), np.float32)
    ca1his = np.zeros((L, T, cfg["ca1num"]), np.float32)
    ca3center = np.linspace(0.0, cfg["tracklength"], cfg["ca3num"]).astype(np.float32)
    for x in range(T):
        ec3input = cue[:, x, :]
        ca3 = np.exp(-((ca3center - x) ** 2) / cfg["ca3sigma"] ** 2 / 2.0)
        for i in range(L):
            t1 = sig(10.0 * (ca3 @ p["wca3ca1"][i] - 0.5))
            t2 = 1.0 + 3.0 * sig(ec3[i] @ p["wec3ca1"][i])
            ca1_i = np.maximum(t1 * t2 - p["ca1bias"][i, 0], 0.0)
            ec5_i = ec5[i] + 10.0 * cfg["ts"] * (ca1_i @ p["wca1ec5"][i]) + p["ec5bias"][i, 0]
            ec5_i = 0.69 + 0.3 * sig(4.0 * (ec5_i - 0.3))
            ec3_i = ec5_i * ec3[i] + 0.6 * ec3input
            ec3[i], ec5[i], ca1[i] = ec3_i, ec5_i, ca1_i
            ec3his[i, x] = ec3_i[0]
            ec5his[i, x] = ec5_i[0]
            ca1his[i, x] = ca1_i[0]
            ec3input = ca1_i @ p["interW"][i] + p["interb"][i, 0]
    act = ca1[-1] @ p["wca1act"] + p["actbias"][0]
    return act, ec3his, ec5his, ca1his


if __name__ == "__main__":
    # small config consistent with the module
    cfg = dict(ts=0.1, ecnum=32, ca1num=32, ca3num=32, ca3sigma=5,
               tracklength=8, actnum=2, loopnum=2)
    bs = 2
    L, E, C1, C3, A = cfg["loopnum"], cfg["ecnum"], cfg["ca1num"], cfg["ca3num"], cfg["actnum"]

    key = jax.random.PRNGKey(0)
    ks = jax.random.split(key, 12)

    xav = lambda fan_in, fan_out: np.sqrt(2.0 / (fan_in + fan_out))
    lin_k = 1.0 / np.sqrt(C1)

    params = {
        # per-loop HPCSingleLoop parameters, stacked on a leading loop axis
        "wca3ca1": jax.random.uniform(ks[0], (L, C3, C1), jnp.float32) * 0.01,
        "wec3ca1": jax.random.normal(ks[1], (L, E, C1), jnp.float32) * xav(E, C1),
        "wca1ec5": jax.random.normal(ks[2], (L, C1, E), jnp.float32) * xav(C1, E),
        "ca1bias": jnp.zeros((L, 1, C1), jnp.float32),
        "ec5bias": jnp.zeros((L, 1, E), jnp.float32),
        # interLayer Linear(ca1num -> ecnum): weight stored pre-transposed (ca1num, ecnum)
        "interW": jax.random.uniform(ks[3], (L, C1, E), jnp.float32,
                                     minval=-lin_k, maxval=lin_k),
        "interb": jax.random.uniform(ks[4], (L, 1, E), jnp.float32,
                                     minval=-lin_k, maxval=lin_k),
        "wca1act": jax.random.normal(ks[5], (C1, A), jnp.float32) * xav(C1, A),
        "actbias": jnp.zeros((1, A), jnp.float32),
    }

    cue_ec3input = jax.random.uniform(ks[6], (bs, cfg["tracklength"], E), jnp.float32)
    ec3_last = jax.random.uniform(ks[7], (L, bs, E), jnp.float32)
    ec5_last = jax.random.uniform(ks[8], (L, bs, E), jnp.float32)
    ca1_last = jax.random.uniform(ks[9], (L, bs, C1), jnp.float32)

    fwd = jax.jit(functools.partial(hpc_dv_forward, cfg=cfg))
    act, ec3his, ec5his, ca1his = fwd(cue_ec3input, ec3_last, ec5_last, ca1_last, params)
    jax.block_until_ready((act, ec3his, ec5his, ca1his))

    act_r, ec3his_r, ec5his_r, ca1his_r = reference_forward(
        cue_ec3input, ec3_last, ec5_last, ca1_last, params, cfg)

    assert act.shape == (bs, A)
    assert ec3his.shape == (L, cfg["tracklength"], E)
    assert ec5his.shape == (L, cfg["tracklength"], E)
    assert ca1his.shape == (L, cfg["tracklength"], C1)
    for got, want in [(act, act_r), (ec3his, ec3his_r),
                      (ec5his, ec5his_r), (ca1his, ca1his_r)]:
        np.testing.assert_allclose(np.asarray(got), want, rtol=2e-3, atol=2e-3)

    print("KERNEL_OK")
</pallas_src>

<mosaic_0001>
module attributes {stable_mosaic.version = 11 : i64} {
  func.func @kernel(%arg0: i32, %arg1: memref<8x2x64xf32, #tpu.memory_space<vmem>>, %arg2: memref<8x64xf32, #tpu.memory_space<vmem>>, %arg3: memref<2x64xf32, #tpu.memory_space<vmem>>, %arg4: memref<2x64xf32, #tpu.memory_space<vmem>>, %arg5: memref<64x64xbf16, #tpu.memory_space<vmem>>, %arg6: memref<1x64xf32, #tpu.memory_space<vmem>>, %arg7: memref<64x128xbf16, #tpu.memory_space<vmem>>, %arg8: memref<1x64xf32, #tpu.memory_space<vmem>>, %arg9: memref<32x2xf32, #tpu.memory_space<vmem>>, %arg10: memref<1x2xf32, #tpu.memory_space<vmem>>, %arg11: memref<8x64xf32, #tpu.memory_space<vmem>>, %arg12: memref<8x64xf32, #tpu.memory_space<vmem>>, %arg13: memref<8x64xf32, #tpu.memory_space<vmem>>, %arg14: memref<2x2xf32, #tpu.memory_space<vmem>>, %arg15: memref<2x64xf32, #tpu.memory_space<vmem>>, %arg16: memref<2x64xf32, #tpu.memory_space<vmem>>) attributes {dimension_semantics = [#tpu.dimension_semantics<arbitrary>], iteration_bounds = array<i64: 1>, scalar_prefetch = 0 : i64, scratch_operands = 2 : i64, tpu.core_type = #tpu.core_type<tc>, window_params = [{transform_indices = @transform_0, window_bounds = array<i64: 8, 2, 64>}, {transform_indices = @transform_1, window_bounds = array<i64: 8, 64>}, {pipeline_mode = #tpu.pipeline_mode<synchronous>, transform_indices = @transform_2, window_bounds = array<i64: 2, 64>}, {pipeline_mode = #tpu.pipeline_mode<synchronous>, transform_indices = @transform_3, window_bounds = array<i64: 2, 64>}, {pipeline_mode = #tpu.pipeline_mode<synchronous>, transform_indices = @transform_4, window_bounds = array<i64: 64, 64>}, {pipeline_mode = #tpu.pipeline_mode<synchronous>, transform_indices = @transform_5, window_bounds = array<i64: 1, 64>}, {pipeline_mode = #tpu.pipeline_mode<synchronous>, transform_indices = @transform_6, window_bounds = array<i64: 64, 128>}, {pipeline_mode = #tpu.pipeline_mode<synchronous>, transform_indices = @transform_7, window_bounds = array<i64: 1, 64>}, {pipeline_mode = #tpu.pipeline_mode<synchronous>, transform_indices = @transform_8, window_bounds = array<i64: 32, 2>}, {pipeline_mode = #tpu.pipeline_mode<synchronous>, transform_indices = @transform_9, window_bounds = array<i64: 1, 2>}, {transform_indices = @transform_10, window_bounds = array<i64: 8, 64>}, {transform_indices = @transform_11, window_bounds = array<i64: 8, 64>}, {transform_indices = @transform_12, window_bounds = array<i64: 8, 64>}, {pipeline_mode = #tpu.pipeline_mode<synchronous>, transform_indices = @transform_13, window_bounds = array<i64: 2, 2>}]} {
    %c0_i32 = arith.constant 0 : i32
    %0 = arith.cmpi eq, %arg0, %c0_i32 : i32
    %1 = arith.extui %0 : i1 to i32
    %c0_i32_0 = arith.constant 0 : i32
    %2 = arith.cmpi ne, %1, %c0_i32_0 : i32
    scf.if %2 {
      %c0_147 = arith.constant 0 : index
      %c0_148 = arith.constant 0 : index
      %399 = vector.load %arg3[%c0_147, %c0_148] : memref<2x64xf32, #tpu.memory_space<vmem>>, vector<2x64xf32>
      %c0_149 = arith.constant 0 : index
      %c0_150 = arith.constant 0 : index
      %400 = vector.load %arg15[%c0_149, %c0_150] : memref<2x64xf32, #tpu.memory_space<vmem>>, vector<2x64xf32>
      tpu.vector_store %arg15[%c0_149, %c0_150], %399 {strides = array<i32>} : memref<2x64xf32, #tpu.memory_space<vmem>>, vector<2x64xf32>,
      %c0_151 = arith.constant 0 : index
      %c0_152 = arith.constant 0 : index
      %401 = vector.load %arg4[%c0_151, %c0_152] : memref<2x64xf32, #tpu.memory_space<vmem>>, vector<2x64xf32>
      %c0_153 = arith.constant 0 : index
      %c0_154 = arith.constant 0 : index
      %402 = vector.load %arg16[%c0_153, %c0_154] : memref<2x64xf32, #tpu.memory_space<vmem>>, vector<2x64xf32>
      tpu.vector_store %arg16[%c0_153, %c0_154], %401 {strides = array<i32>} : memref<2x64xf32, #tpu.memory_space<vmem>>, vector<2x64xf32>,
    } else {
    }
    %c0 = arith.constant 0 : index
    %c0_1 = arith.constant 0 : index
    %3 = vector.load %arg5[%c0, %c0_1] : memref<64x64xbf16, #tpu.memory_space<vmem>>, vector<64x64xbf16>
    %c0_2 = arith.constant 0 : index
    %c0_3 = arith.constant 0 : index
    %4 = vector.load %arg7[%c0_2, %c0_3] : memref<64x128xbf16, #tpu.memory_space<vmem>>, vector<64x128xbf16>
    %c0_4 = arith.constant 0 : index
    %c0_5 = arith.constant 0 : index
    %5 = vector.load %arg6[%c0_4, %c0_5] : memref<1x64xf32, #tpu.memory_space<vmem>>, vector<1x64xf32>
    %c0_6 = arith.constant 0 : index
    %c0_7 = arith.constant 0 : index
    %6 = vector.load %arg8[%c0_6, %c0_7] : memref<1x64xf32, #tpu.memory_space<vmem>>, vector<1x64xf32>
    %c0_8 = arith.constant 0 : index
    %c0_9 = arith.constant 0 : index
    %7 = vector.load %arg15[%c0_8, %c0_9] : memref<2x64xf32, #tpu.memory_space<vmem>>, vector<2x64xf32>
    %c0_10 = arith.constant 0 : index
    %c0_11 = arith.constant 0 : index
    %8 = vector.load %arg16[%c0_10, %c0_11] : memref<2x64xf32, #tpu.memory_space<vmem>>, vector<2x64xf32>
    %cst = arith.constant 0.000000e+00 : f32
    %9 = vector.broadcast %cst : f32 to vector<2x64xf32>
    %c0_i32_12 = arith.constant 0 : i32
    %10 = arith.index_cast %c0_i32_12 : i32 to index
    %c0_13 = arith.constant 0 : index
    %11 = vector.load %arg2[%10, %c0_13] : memref<8x64xf32, #tpu.memory_space<vmem>>, vector<1x64xf32>
    %12 = arith.index_cast %c0_i32_12 : i32 to index
    %c0_14 = arith.constant 0 : index
    %c0_15 = arith.constant 0 : index
    %13 = vector.load %arg1[%12, %c0_14, %c0_15] : memref<8x2x64xf32, #tpu.memory_space<vmem>>, vector<1x2x64xf32>
    %14 = vector.shape_cast %13 : vector<1x2x64xf32> to vector<2x64xf32>
    %15 = arith.truncf %7 : vector<2x64xf32> to vector<2x64xbf16>
    %cst_16 = arith.constant dense<0.000000e+00> : vector<2x64xf32>
    %16 = tpu.matmul %15, %3, %cst_16 {dimension_numbers = #tpu.dot_dimension_numbers<[1], [0], [0], [1], [0, 0, 1, 1], [], []>} : vector<2x64xbf16>, vector<64x64xbf16>, vector<2x64xf32> -> vector<2x64xf32>
    %17 = math.tanh %16 : vector<2x64xf32>
    %cst_17 = arith.constant 1.500000e+00 : f32
    %18 = vector.broadcast %cst_17 : f32 to vector<2x64xf32>
    %19 = arith.mulf %18, %17 : vector<2x64xf32>
    %cst_18 = arith.constant 2.500000e+00 : f32
    %20 = vector.broadcast %cst_18 : f32 to vector<2x64xf32>
    %21 = arith.addf %20, %19 : vector<2x64xf32>
    %22 = vector.broadcast %11 : vector<1x64xf32> to vector<2x64xf32>
    %23 = arith.mulf %22, %21 : vector<2x64xf32>
    %24 = vector.broadcast %5 : vector<1x64xf32> to vector<2x64xf32>
    %25 = arith.subf %23, %24 : vector<2x64xf32>
    %cst_19 = arith.constant 0.000000e+00 : f32
    %26 = vector.broadcast %cst_19 : f32 to vector<2x64xf32>
    %27 = arith.maximumf %25, %26 : vector<2x64xf32>
    %28 = arith.truncf %27 : vector<2x64xf32> to vector<2x64xbf16>
    %cst_20 = arith.constant dense<0.000000e+00> : vector<2x128xf32>
    %29 = tpu.matmul %28, %4, %cst_20 {dimension_numbers = #tpu.dot_dimension_numbers<[1], [0], [0], [1], [0, 0, 1, 1], [], []>} : vector<2x64xbf16>, vector<64x128xbf16>, vector<2x128xf32> -> vector<2x128xf32>
    %30 = vector.extract_strided_slice %29 {offsets = [0, 0], sizes = [2, 64], strides = [1, 1]} : vector<2x128xf32> to vector<2x64xf32>
    %31 = arith.addf %8, %30 : vector<2x64xf32>
    %32 = vector.broadcast %6 : vector<1x64xf32> to vector<2x64xf32>
    %33 = arith.addf %31, %32 : vector<2x64xf32>
    %cst_21 = arith.constant 2.000000e+00 : f32
    %34 = vector.broadcast %cst_21 : f32 to vector<2x64xf32>
    %35 = arith.mulf %34, %33 : vector<2x64xf32>
    %cst_22 = arith.constant 6.000000e-01 : f32
    %36 = vector.broadcast %cst_22 : f32 to vector<2x64xf32>
    %37 = arith.subf %35, %36 : vector<2x64xf32>
    %38 = math.tanh %37 : vector<2x64xf32>
    %cst_23 = arith.constant 1.500000e-01 : f32
    %39 = vector.broadcast %cst_23 : f32 to vector<2x64xf32>
    %40 = arith.mulf %39, %38 : vector<2x64xf32>
    %cst_24 = arith.constant 0.839999973 : f32
    %41 = vector.broadcast %cst_24 : f32 to vector<2x64xf32>
    %42 = arith.addf %41, %40 : vector<2x64xf32>
    %43 = arith.mulf %42, %7 : vector<2x64xf32>
    %44 = vector.extract_strided_slice %29 {offsets = [0, 64], sizes = [2, 64], strides = [1, 1]} : vector<2x128xf32> to vector<2x64xf32>
    %45 = arith.addf %14, %44 : vector<2x64xf32>
    %cst_25 = arith.constant 6.000000e-01 : f32
    %46 = vector.broadcast %cst_25 : f32 to vector<2x64xf32>
    %47 = arith.mulf %46, %45 : vector<2x64xf32>
    %48 = arith.addf %43, %47 : vector<2x64xf32>
    %49 = vector.extract_strided_slice %48 {offsets = [0, 0], sizes = [1, 64], strides = [1, 1]} : vector<2x64xf32> to vector<1x64xf32>
    %50 = arith.index_cast %c0_i32_12 : i32 to index
    %c0_26 = arith.constant 0 : index
    %51 = vector.load %arg11[%50, %c0_26] : memref<8x64xf32, #tpu.memory_space<vmem>>, vector<1x64xf32>
    tpu.vector_store %arg11[%50, %c0_26], %49 {strides = array<i32>} : memref<8x64xf32, #tpu.memory_space<vmem>>, vector<1x64xf32>,
    %52 = vector.extract_strided_slice %42 {offsets = [0, 0], sizes = [1, 64], strides = [1, 1]} : vector<2x64xf32> to vector<1x64xf32>
    %53 = arith.index_cast %c0_i32_12 : i32 to index
    %c0_27 = arith.constant 0 : index
    %54 = vector.load %arg12[%53, %c0_27] : memref<8x64xf32, #tpu.memory_space<vmem>>, vector<1x64xf32>
    tpu.vector_store %arg12[%53, %c0_27], %52 {strides = array<i32>} : memref<8x64xf32, #tpu.memory_space<vmem>>, vector<1x64xf32>,
    %55 = vector.extract_strided_slice %27 {offsets = [0, 0], sizes = [1, 64], strides = [1, 1]} : vector<2x64xf32> to vector<1x64xf32>
    %56 = arith.index_cast %c0_i32_12 : i32 to index
    %c0_28 = arith.constant 0 : index
    %57 = vector.load %arg13[%56, %c0_28] : memref<8x64xf32, #tpu.memory_space<vmem>>, vector<1x64xf32>
    tpu.vector_store %arg13[%56, %c0_28], %55 {strides = array<i32>} : memref<8x64xf32, #tpu.memory_space<vmem>>, vector<1x64xf32>,
    %c1_i32 = arith.constant 1 : i32
    %58 = arith.index_cast %c1_i32 : i32 to index
    %c0_29 = arith.constant 0 : index
    %59 = vector.load %arg2[%58, %c0_29] : memref<8x64xf32, #tpu.memory_space<vmem>>, vector<1x64xf32>
    %60 = arith.index_cast %c1_i32 : i32 to index
    %c0_30 = arith.constant 0 : index
    %c0_31 = arith.constant 0 : index
    %61 = vector.load %arg1[%60, %c0_30, %c0_31] : memref<8x2x64xf32, #tpu.memory_space<vmem>>, vector<1x2x64xf32>
    %62 = vector.shape_cast %61 : vector<1x2x64xf32> to vector<2x64xf32>
    %63 = arith.truncf %48 : vector<2x64xf32> to vector<2x64xbf16>
    %cst_32 = arith.constant dense<0.000000e+00> : vector<2x64xf32>
    %64 = tpu.matmul %63, %3, %cst_32 {dimension_numbers = #tpu.dot_dimension_numbers<[1], [0], [0], [1], [0, 0, 1, 1], [], []>} : vector<2x64xbf16>, vector<64x64xbf16>, vector<2x64xf32> -> vector<2x64xf32>
    %65 = math.tanh %64 : vector<2x64xf32>
    %cst_33 = arith.constant 1.500000e+00 : f32
    %66 = vector.broadcast %cst_33 : f32 to vector<2x64xf32>
    %67 = arith.mulf %66, %65 : vector<2x64xf32>
    %cst_34 = arith.constant 2.500000e+00 : f32
    %68 = vector.broadcast %cst_34 : f32 to vector<2x64xf32>
    %69 = arith.addf %68, %67 : vector<2x64xf32>
    %70 = vector.broadcast %59 : vector<1x64xf32> to vector<2x64xf32>
    %71 = arith.mulf %70, %69 : vector<2x64xf32>
    %72 = vector.broadcast %5 : vector<1x64xf32> to vector<2x64xf32>
    %73 = arith.subf %71, %72 : vector<2x64xf32>
    %cst_35 = arith.constant 0.000000e+00 : f32
    %74 = vector.broadcast %cst_35 : f32 to vector<2x64xf32>
    %75 = arith.maximumf %73, %74 : vector<2x64xf32>
    %76 = arith.truncf %75 : vector<2x64xf32> to vector<2x64xbf16>
    %cst_36 = arith.constant dense<0.000000e+00> : vector<2x128xf32>
    %77 = tpu.matmul %76, %4, %cst_36 {dimension_numbers = #tpu.dot_dimension_numbers<[1], [0], [0], [1], [0, 0, 1, 1], [], []>} : vector<2x64xbf16>, vector<64x128xbf16>, vector<2x128xf32> -> vector<2x128xf32>
    %78 = vector.extract_strided_slice %77 {offsets = [0, 0], sizes = [2, 64], strides = [1, 1]} : vector<2x128xf32> to vector<2x64xf32>
    %79 = arith.addf %42, %78 : vector<2x64xf32>
    %80 = vector.broadcast %6 : vector<1x64xf32> to vector<2x64xf32>
    %81 = arith.addf %79, %80 : vector<2x64xf32>
    %cst_37 = arith.constant 2.000000e+00 : f32
    %82 = vector.broadcast %cst_37 : f32 to vector<2x64xf32>
    %83 = arith.mulf %82, %81 : vector<2x64xf32>
    %cst_38 = arith.constant 6.000000e-01 : f32
    %84 = vector.broadcast %cst_38 : f32 to vector<2x64xf32>
    %85 = arith.subf %83, %84 : vector<2x64xf32>
    %86 = math.tanh %85 : vector<2x64xf32>
    %cst_39 = arith.constant 1.500000e-01 : f32
    %87 = vector.broadcast %cst_39 : f32 to vector<2x64xf32>
    %88 = arith.mulf %87, %86 : vector<2x64xf32>
    %cst_40 = arith.constant 0.839999973 : f32
    %89 = vector.broadcast %cst_40 : f32 to vector<2x64xf32>
    %90 = arith.addf %89, %88 : vector<2x64xf32>
    %91 = arith.mulf %90, %48 : vector<2x64xf32>
    %92 = vector.extract_strided_slice %77 {offsets = [0, 64], sizes = [2, 64], strides = [1, 1]} : vector<2x128xf32> to vector<2x64xf32>
    %93 = arith.addf %62, %92 : vector<2x64xf32>
    %cst_41 = arith.constant 6.000000e-01 : f32
    %94 = vector.broadcast %cst_41 : f32 to vector<2x64xf32>
    %95 = arith.mulf %94, %93 : vector<2x64xf32>
    %96 = arith.addf %91, %95 : vector<2x64xf32>
    %97 = vector.extract_strided_slice %96 {offsets = [0, 0], sizes = [1, 64], strides = [1, 1]} : vector<2x64xf32> to vector<1x64xf32>
    %98 = arith.index_cast %c1_i32 : i32 to index
    %c0_42 = arith.constant 0 : index
    %99 = vector.load %arg11[%98, %c0_42] : memref<8x64xf32, #tpu.memory_space<vmem>>, vector<1x64xf32>
    tpu.vector_store %arg11[%98, %c0_42], %97 {strides = array<i32>} : memref<8x64xf32, #tpu.memory_space<vmem>>, vector<1x64xf32>,
    %100 = vector.extract_strided_slice %90 {offsets = [0, 0], sizes = [1, 64], strides = [1, 1]} : vector<2x64xf32> to vector<1x64xf32>
    %101 = arith.index_cast %c1_i32 : i32 to index
    %c0_43 = arith.constant 0 : index
    %102 = vector.load %arg12[%101, %c0_43] : memref<8x64xf32, #tpu.memory_space<vmem>>, vector<1x64xf32>
    tpu.vector_store %arg12[%101, %c0_43], %100 {strides = array<i32>} : memref<8x64xf32, #tpu.memory_space<vmem>>, vector<1x64xf32>,
    %103 = vector.extract_strided_slice %75 {offsets = [0, 0], sizes = [1, 64], strides = [1, 1]} : vector<2x64xf32> to vector<1x64xf32>
    %104 = arith.index_cast %c1_i32 : i32 to index
    %c0_44 = arith.constant 0 : index
    %105 = vector.load %arg13[%104, %c0_44] : memref<8x64xf32, #tpu.memory_space<vmem>>, vector<1x64xf32>
    tpu.vector_store %arg13[%104, %c0_44], %103 {strides = array<i32>} : memref<8x64xf32, #tpu.memory_space<vmem>>, vector<1x64xf32>,
    %c2_i32 = arith.constant 2 : i32
    %106 = arith.index_cast %c2_i32 : i32 to index
    %c0_45 = arith.constant 0 : index
    %107 = vector.load %arg2[%106, %c0_45] : memref<8x64xf32, #tpu.memory_space<vmem>>, vector<1x64xf32>
    %108 = arith.index_cast %c2_i32 : i32 to index
    %c0_46 = arith.constant 0 : index
    %c0_47 = arith.constant 0 : index
    %109 = vector.load %arg1[%108, %c0_46, %c0_47] : memref<8x2x64xf32, #tpu.memory_space<vmem>>, vector<1x2x64xf32>
    %110 = vector.shape_cast %109 : vector<1x2x64xf32> to vector<2x64xf32>
    %111 = arith.truncf %96 : vector<2x64xf32> to vector<2x64xbf16>
    %cst_48 = arith.constant dense<0.000000e+00> : vector<2x64xf32>
    %112 = tpu.matmul %111, %3, %cst_48 {dimension_numbers = #tpu.dot_dimension_numbers<[1], [0], [0], [1], [0, 0, 1, 1], [], []>} : vector<2x64xbf16>, vector<64x64xbf16>, vector<2x64xf32> -> vector<2x64xf32>
    %113 = math.tanh %112 : vector<2x64xf32>
    %cst_49 = arith.constant 1.500000e+00 : f32
    %114 = vector.broadcast %cst_49 : f32 to vector<2x64xf32>
    %115 = arith.mulf %114, %113 : vector<2x64xf32>
    %cst_50 = arith.constant 2.500000e+00 : f32
    %116 = vector.broadcast %cst_50 : f32 to vector<2x64xf32>
    %117 = arith.addf %116, %115 : vector<2x64xf32>
    %118 = vector.broadcast %107 : vector<1x64xf32> to vector<2x64xf32>
    %119 = arith.mulf %118, %117 : vector<2x64xf32>
    %120 = vector.broadcast %5 : vector<1x64xf32> to vector<2x64xf32>
    %121 = arith.subf %119, %120 : vector<2x64xf32>
    %cst_51 = arith.constant 0.000000e+00 : f32
    %122 = vector.broadcast %cst_51 : f32 to vector<2x64xf32>
    %123 = arith.maximumf %121, %122 : vector<2x64xf32>
    %124 = arith.truncf %123 : vector<2x64xf32> to vector<2x64xbf16>
    %cst_52 = arith.constant dense<0.000000e+00> : vector<2x128xf32>
    %125 = tpu.matmul %124, %4, %cst_52 {dimension_numbers = #tpu.dot_dimension_numbers<[1], [0], [0], [1], [0, 0, 1, 1], [], []>} : vector<2x64xbf16>, vector<64x128xbf16>, vector<2x128xf32> -> vector<2x128xf32>
    %126 = vector.extract_strided_slice %125 {offsets = [0, 0], sizes = [2, 64], strides = [1, 1]} : vector<2x128xf32> to vector<2x64xf32>
    %127 = arith.addf %90, %126 : vector<2x64xf32>
    %128 = vector.broadcast %6 : vector<1x64xf32> to vector<2x64xf32>
    %129 = arith.addf %127, %128 : vector<2x64xf32>
    %cst_53 = arith.constant 2.000000e+00 : f32
    %130 = vector.broadcast %cst_53 : f32 to vector<2x64xf32>
    %131 = arith.mulf %130, %129 : vector<2x64xf32>
    %cst_54 = arith.constant 6.000000e-01 : f32
    %132 = vector.broadcast %cst_54 : f32 to vector<2x64xf32>
    %133 = arith.subf %131, %132 : vector<2x64xf32>
    %134 = math.tanh %133 : vector<2x64xf32>
    %cst_55 = arith.constant 1.500000e-01 : f32
    %135 = vector.broadcast %cst_55 : f32 to vector<2x64xf32>
    %136 = arith.mulf %135, %134 : vector<2x64xf32>
    %cst_56 = arith.constant 0.839999973 : f32
    %137 = vector.broadcast %cst_56 : f32 to vector<2x64xf32>
    %138 = arith.addf %137, %136 : vector<2x64xf32>
    %139 = arith.mulf %138, %96 : vector<2x64xf32>
    %140 = vector.extract_strided_slice %125 {offsets = [0, 64], sizes = [2, 64], strides = [1, 1]} : vector<2x128xf32> to vector<2x64xf32>
    %141 = arith.addf %110, %140 : vector<2x64xf32>
    %cst_57 = arith.constant 6.000000e-01 : f32
    %142 = vector.broadcast %cst_57 : f32 to vector<2x64xf32>
    %143 = arith.mulf %142, %141 : vector<2x64xf32>
    %144 = arith.addf %139, %143 : vector<2x64xf32>
    %145 = vector.extract_strided_slice %144 {offsets = [0, 0], sizes = [1, 64], strides = [1, 1]} : vector<2x64xf32> to vector<1x64xf32>
    %146 = arith.index_cast %c2_i32 : i32 to index
    %c0_58 = arith.constant 0 : index
    %147 = vector.load %arg11[%146, %c0_58] : memref<8x64xf32, #tpu.memory_space<vmem>>, vector<1x64xf32>
    tpu.vector_store %arg11[%146, %c0_58], %145 {strides = array<i32>} : memref<8x64xf32, #tpu.memory_space<vmem>>, vector<1x64xf32>,
    %148 = vector.extract_strided_slice %138 {offsets = [0, 0], sizes = [1, 64], strides = [1, 1]} : vector<2x64xf32> to vector<1x64xf32>
    %149 = arith.index_cast %c2_i32 : i32 to index
    %c0_59 = arith.constant 0 : index
    %150 = vector.load %arg12[%149, %c0_59] : memref<8x64xf32, #tpu.memory_space<vmem>>, vector<1x64xf32>
    tpu.vector_store %arg12[%149, %c0_59], %148 {strides = array<i32>} : memref<8x64xf32, #tpu.memory_space<vmem>>, vector<1x64xf32>,
    %151 = vector.extract_strided_slice %123 {offsets = [0, 0], sizes = [1, 64], strides = [1, 1]} : vector<2x64xf32> to vector<1x64xf32>
    %152 = arith.index_cast %c2_i32 : i32 to index
    %c0_60 = arith.constant 0 : index
    %153 = vector.load %arg13[%152, %c0_60] : memref<8x64xf32, #tpu.memory_space<vmem>>, vector<1x64xf32>
    tpu.vector_store %arg13[%152, %c0_60], %151 {strides = array<i32>} : memref<8x64xf32, #tpu.memory_space<vmem>>, vector<1x64xf32>,
    %c3_i32 = arith.constant 3 : i32
    %154 = arith.index_cast %c3_i32 : i32 to index
    %c0_61 = arith.constant 0 : index
    %155 = vector.load %arg2[%154, %c0_61] : memref<8x64xf32, #tpu.memory_space<vmem>>, vector<1x64xf32>
    %156 = arith.index_cast %c3_i32 : i32 to index
    %c0_62 = arith.constant 0 : index
    %c0_63 = arith.constant 0 : index
    %157 = vector.load %arg1[%156, %c0_62, %c0_63] : memref<8x2x64xf32, #tpu.memory_space<vmem>>, vector<1x2x64xf32>
    %158 = vector.shape_cast %157 : vector<1x2x64xf32> to vector<2x64xf32>
    %159 = arith.truncf %144 : vector<2x64xf32> to vector<2x64xbf16>
    %cst_64 = arith.constant dense<0.000000e+00> : vector<2x64xf32>
    %160 = tpu.matmul %159, %3, %cst_64 {dimension_numbers = #tpu.dot_dimension_numbers<[1], [0], [0], [1], [0, 0, 1, 1], [], []>} : vector<2x64xbf16>, vector<64x64xbf16>, vector<2x64xf32> -> vector<2x64xf32>
    %161 = math.tanh %160 : vector<2x64xf32>
    %cst_65 = arith.constant 1.500000e+00 : f32
    %162 = vector.broadcast %cst_65 : f32 to vector<2x64xf32>
    %163 = arith.mulf %162, %161 : vector<2x64xf32>
    %cst_66 = arith.constant 2.500000e+00 : f32
    %164 = vector.broadcast %cst_66 : f32 to vector<2x64xf32>
    %165 = arith.addf %164, %163 : vector<2x64xf32>
    %166 = vector.broadcast %155 : vector<1x64xf32> to vector<2x64xf32>
    %167 = arith.mulf %166, %165 : vector<2x64xf32>
    %168 = vector.broadcast %5 : vector<1x64xf32> to vector<2x64xf32>
    %169 = arith.subf %167, %168 : vector<2x64xf32>
    %cst_67 = arith.constant 0.000000e+00 : f32
    %170 = vector.broadcast %cst_67 : f32 to vector<2x64xf32>
    %171 = arith.maximumf %169, %170 : vector<2x64xf32>
    %172 = arith.truncf %171 : vector<2x64xf32> to vector<2x64xbf16>
    %cst_68 = arith.constant dense<0.000000e+00> : vector<2x128xf32>
    %173 = tpu.matmul %172, %4, %cst_68 {dimension_numbers = #tpu.dot_dimension_numbers<[1], [0], [0], [1], [0, 0, 1, 1], [], []>} : vector<2x64xbf16>, vector<64x128xbf16>, vector<2x128xf32> -> vector<2x128xf32>
    %174 = vector.extract_strided_slice %173 {offsets = [0, 0], sizes = [2, 64], strides = [1, 1]} : vector<2x128xf32> to vector<2x64xf32>
    %175 = arith.addf %138, %174 : vector<2x64xf32>
    %176 = vector.broadcast %6 : vector<1x64xf32> to vector<2x64xf32>
    %177 = arith.addf %175, %176 : vector<2x64xf32>
    %cst_69 = arith.constant 2.000000e+00 : f32
    %178 = vector.broadcast %cst_69 : f32 to vector<2x64xf32>
    %179 = arith.mulf %178, %177 : vector<2x64xf32>
    %cst_70 = arith.constant 6.000000e-01 : f32
    %180 = vector.broadcast %cst_70 : f32 to vector<2x64xf32>
    %181 = arith.subf %179, %180 : vector<2x64xf32>
    %182 = math.tanh %181 : vector<2x64xf32>
    %cst_71 = arith.constant 1.500000e-01 : f32
    %183 = vector.broadcast %cst_71 : f32 to vector<2x64xf32>
    %184 = arith.mulf %183, %182 : vector<2x64xf32>
    %cst_72 = arith.constant 0.839999973 : f32
    %185 = vector.broadcast %cst_72 : f32 to vector<2x64xf32>
    %186 = arith.addf %185, %184 : vector<2x64xf32>
    %187 = arith.mulf %186, %144 : vector<2x64xf32>
    %188 = vector.extract_strided_slice %173 {offsets = [0, 64], sizes = [2, 64], strides = [1, 1]} : vector<2x128xf32> to vector<2x64xf32>
    %189 = arith.addf %158, %188 : vector<2x64xf32>
    %cst_73 = arith.constant 6.000000e-01 : f32
    %190 = vector.broadcast %cst_73 : f32 to vector<2x64xf32>
    %191 = arith.mulf %190, %189 : vector<2x64xf32>
    %192 = arith.addf %187, %191 : vector<2x64xf32>
    %193 = vector.extract_strided_slice %192 {offsets = [0, 0], sizes = [1, 64], strides = [1, 1]} : vector<2x64xf32> to vector<1x64xf32>
    %194 = arith.index_cast %c3_i32 : i32 to index
    %c0_74 = arith.constant 0 : index
    %195 = vector.load %arg11[%194, %c0_74] : memref<8x64xf32, #tpu.memory_space<vmem>>, vector<1x64xf32>
    tpu.vector_store %arg11[%194, %c0_74], %193 {strides = array<i32>} : memref<8x64xf32, #tpu.memory_space<vmem>>, vector<1x64xf32>,
    %196 = vector.extract_strided_slice %186 {offsets = [0, 0], sizes = [1, 64], strides = [1, 1]} : vector<2x64xf32> to vector<1x64xf32>
    %197 = arith.index_cast %c3_i32 : i32 to index
    %c0_75 = arith.constant 0 : index
    %198 = vector.load %arg12[%197, %c0_75] : memref<8x64xf32, #tpu.memory_space<vmem>>, vector<1x64xf32>
    tpu.vector_store %arg12[%197, %c0_75], %196 {strides = array<i32>} : memref<8x64xf32, #tpu.memory_space<vmem>>, vector<1x64xf32>,
    %199 = vector.extract_strided_slice %171 {offsets = [0, 0], sizes = [1, 64], strides = [1, 1]} : vector<2x64xf32> to vector<1x64xf32>
    %200 = arith.index_cast %c3_i32 : i32 to index
    %c0_76 = arith.constant 0 : index
    %201 = vector.load %arg13[%200, %c0_76] : memref<8x64xf32, #tpu.memory_space<vmem>>, vector<1x64xf32>
    tpu.vector_store %arg13[%200, %c0_76], %199 {strides = array<i32>} : memref<8x64xf32, #tpu.memory_space<vmem>>, vector<1x64xf32>,
    %c4_i32 = arith.constant 4 : i32
    %202 = arith.index_cast %c4_i32 : i32 to index
    %c0_77 = arith.constant 0 : index
    %203 = vector.load %arg2[%202, %c0_77] : memref<8x64xf32, #tpu.memory_space<vmem>>, vector<1x64xf32>
    %204 = arith.index_cast %c4_i32 : i32 to index
    %c0_78 = arith.constant 0 : index
    %c0_79 = arith.constant 0 : index
    %205 = vector.load %arg1[%204, %c0_78, %c0_79] : memref<8x2x64xf32, #tpu.memory_space<vmem>>, vector<1x2x64xf32>
    %206 = vector.shape_cast %205 : vector<1x2x64xf32> to vector<2x64xf32>
    %207 = arith.truncf %192 : vector<2x64xf32> to vector<2x64xbf16>
    %cst_80 = arith.constant dense<0.000000e+00> : vector<2x64xf32>
    %208 = tpu.matmul %207, %3, %cst_80 {dimension_numbers = #tpu.dot_dimension_numbers<[1], [0], [0], [1], [0, 0, 1, 1], [], []>} : vector<2x64xbf16>, vector<64x64xbf16>, vector<2x64xf32> -> vector<2x64xf32>
    %209 = math.tanh %208 : vector<2x64xf32>
    %cst_81 = arith.constant 1.500000e+00 : f32
    %210 = vector.broadcast %cst_81 : f32 to vector<2x64xf32>
    %211 = arith.mulf %210, %209 : vector<2x64xf32>
    %cst_82 = arith.constant 2.500000e+00 : f32
    %212 = vector.broadcast %cst_82 : f32 to vector<2x64xf32>
    %213 = arith.addf %212, %211 : vector<2x64xf32>
    %214 = vector.broadcast %203 : vector<1x64xf32> to vector<2x64xf32>
    %215 = arith.mulf %214, %213 : vector<2x64xf32>
    %216 = vector.broadcast %5 : vector<1x64xf32> to vector<2x64xf32>
    %217 = arith.subf %215, %216 : vector<2x64xf32>
    %cst_83 = arith.constant 0.000000e+00 : f32
    %218 = vector.broadcast %cst_83 : f32 to vector<2x64xf32>
    %219 = arith.maximumf %217, %218 : vector<2x64xf32>
    %220 = arith.truncf %219 : vector<2x64xf32> to vector<2x64xbf16>
    %cst_84 = arith.constant dense<0.000000e+00> : vector<2x128xf32>
    %221 = tpu.matmul %220, %4, %cst_84 {dimension_numbers = #tpu.dot_dimension_numbers<[1], [0], [0], [1], [0, 0, 1, 1], [], []>} : vector<2x64xbf16>, vector<64x128xbf16>, vector<2x128xf32> -> vector<2x128xf32>
    %222 = vector.extract_strided_slice %221 {offsets = [0, 0], sizes = [2, 64], strides = [1, 1]} : vector<2x128xf32> to vector<2x64xf32>
    %223 = arith.addf %186, %222 : vector<2x64xf32>
    %224 = vector.broadcast %6 : vector<1x64xf32> to vector<2x64xf32>
    %225 = arith.addf %223, %224 : vector<2x64xf32>
    %cst_85 = arith.constant 2.000000e+00 : f32
    %226 = vector.broadcast %cst_85 : f32 to vector<2x64xf32>
    %227 = arith.mulf %226, %225 : vector<2x64xf32>
    %cst_86 = arith.constant 6.000000e-01 : f32
    %228 = vector.broadcast %cst_86 : f32 to vector<2x64xf32>
    %229 = arith.subf %227, %228 : vector<2x64xf32>
    %230 = math.tanh %229 : vector<2x64xf32>
    %cst_87 = arith.constant 1.500000e-01 : f32
    %231 = vector.broadcast %cst_87 : f32 to vector<2x64xf32>
    %232 = arith.mulf %231, %230 : vector<2x64xf32>
    %cst_88 = arith.constant 0.839999973 : f32
    %233 = vector.broadcast %cst_88 : f32 to vector<2x64xf32>
    %234 = arith.addf %233, %232 : vector<2x64xf32>
    %235 = arith.mulf %234, %192 : vector<2x64xf32>
    %236 = vector.extract_strided_slice %221 {offsets = [0, 64], sizes = [2, 64], strides = [1, 1]} : vector<2x128xf32> to vector<2x64xf32>
    %237 = arith.addf %206, %236 : vector<2x64xf32>
    %cst_89 = arith.constant 6.000000e-01 : f32
    %238 = vector.broadcast %cst_89 : f32 to vector<2x64xf32>
    %239 = arith.mulf %238, %237 : vector<2x64xf32>
    %240 = arith.addf %235, %239 : vector<2x64xf32>
    %241 = vector.extract_strided_slice %240 {offsets = [0, 0], sizes = [1, 64], strides = [1, 1]} : vector<2x64xf32> to vector<1x64xf32>
    %242 = arith.index_cast %c4_i32 : i32 to index
    %c0_90 = arith.constant 0 : index
    %243 = vector.load %arg11[%242, %c0_90] : memref<8x64xf32, #tpu.memory_space<vmem>>, vector<1x64xf32>
    tpu.vector_store %arg11[%242, %c0_90], %241 {strides = array<i32>} : memref<8x64xf32, #tpu.memory_space<vmem>>, vector<1x64xf32>,
    %244 = vector.extract_strided_slice %234 {offsets = [0, 0], sizes = [1, 64], strides = [1, 1]} : vector<2x64xf32> to vector<1x64xf32>
    %245 = arith.index_cast %c4_i32 : i32 to index
    %c0_91 = arith.constant 0 : index
    %246 = vector.load %arg12[%245, %c0_91] : memref<8x64xf32, #tpu.memory_space<vmem>>, vector<1x64xf32>
    tpu.vector_store %arg12[%245, %c0_91], %244 {strides = array<i32>} : memref<8x64xf32, #tpu.memory_space<vmem>>, vector<1x64xf32>,
    %247 = vector.extract_strided_slice %219 {offsets = [0, 0], sizes = [1, 64], strides = [1, 1]} : vector<2x64xf32> to vector<1x64xf32>
    %248 = arith.index_cast %c4_i32 : i32 to index
    %c0_92 = arith.constant 0 : index
    %249 = vector.load %arg13[%248, %c0_92] : memref<8x64xf32, #tpu.memory_space<vmem>>, vector<1x64xf32>
    tpu.vector_store %arg13[%248, %c0_92], %247 {strides = array<i32>} : memref<8x64xf32, #tpu.memory_space<vmem>>, vector<1x64xf32>,
    %c5_i32 = arith.constant 5 : i32
    %250 = arith.index_cast %c5_i32 : i32 to index
    %c0_93 = arith.constant 0 : index
    %251 = vector.load %arg2[%250, %c0_93] : memref<8x64xf32, #tpu.memory_space<vmem>>, vector<1x64xf32>
    %252 = arith.index_cast %c5_i32 : i32 to index
    %c0_94 = arith.constant 0 : index
    %c0_95 = arith.constant 0 : index
    %253 = vector.load %arg1[%252, %c0_94, %c0_95] : memref<8x2x64xf32, #tpu.memory_space<vmem>>, vector<1x2x64xf32>
    %254 = vector.shape_cast %253 : vector<1x2x64xf32> to vector<2x64xf32>
    %255 = arith.truncf %240 : vector<2x64xf32> to vector<2x64xbf16>
    %cst_96 = arith.constant dense<0.000000e+00> : vector<2x64xf32>
    %256 = tpu.matmul %255, %3, %cst_96 {dimension_numbers = #tpu.dot_dimension_numbers<[1], [0], [0], [1], [0, 0, 1, 1], [], []>} : vector<2x64xbf16>, vector<64x64xbf16>, vector<2x64xf32> -> vector<2x64xf32>
    %257 = math.tanh %256 : vector<2x64xf32>
    %cst_97 = arith.constant 1.500000e+00 : f32
    %258 = vector.broadcast %cst_97 : f32 to vector<2x64xf32>
    %259 = arith.mulf %258, %257 : vector<2x64xf32>
    %cst_98 = arith.constant 2.500000e+00 : f32
    %260 = vector.broadcast %cst_98 : f32 to vector<2x64xf32>
    %261 = arith.addf %260, %259 : vector<2x64xf32>
    %262 = vector.broadcast %251 : vector<1x64xf32> to vector<2x64xf32>
    %263 = arith.mulf %262, %261 : vector<2x64xf32>
    %264 = vector.broadcast %5 : vector<1x64xf32> to vector<2x64xf32>
    %265 = arith.subf %263, %264 : vector<2x64xf32>
    %cst_99 = arith.constant 0.000000e+00 : f32
    %266 = vector.broadcast %cst_99 : f32 to vector<2x64xf32>
    %267 = arith.maximumf %265, %266 : vector<2x64xf32>
    %268 = arith.truncf %267 : vector<2x64xf32> to vector<2x64xbf16>
    %cst_100 = arith.constant dense<0.000000e+00> : vector<2x128xf32>
    %269 = tpu.matmul %268, %4, %cst_100 {dimension_numbers = #tpu.dot_dimension_numbers<[1], [0], [0], [1], [0, 0, 1, 1], [], []>} : vector<2x64xbf16>, vector<64x128xbf16>, vector<2x128xf32> -> vector<2x128xf32>
    %270 = vector.extract_strided_slice %269 {offsets = [0, 0], sizes = [2, 64], strides = [1, 1]} : vector<2x128xf32> to vector<2x64xf32>
    %271 = arith.addf %234, %270 : vector<2x64xf32>
    %272 = vector.broadcast %6 : vector<1x64xf32> to vector<2x64xf32>
    %273 = arith.addf %271, %272 : vector<2x64xf32>
    %cst_101 = arith.constant 2.000000e+00 : f32
    %274 = vector.broadcast %cst_101 : f32 to vector<2x64xf32>
    %275 = arith.mulf %274, %273 : vector<2x64xf32>
    %cst_102 = arith.constant 6.000000e-01 : f32
    %276 = vector.broadcast %cst_102 : f32 to vector<2x64xf32>
    %277 = arith.subf %275, %276 : vector<2x64xf32>
    %278 = math.tanh %277 : vector<2x64xf32>
    %cst_103 = arith.constant 1.500000e-01 : f32
    %279 = vector.broadcast %cst_103 : f32 to vector<2x64xf32>
    %280 = arith.mulf %279, %278 : vector<2x64xf32>
    %cst_104 = arith.constant 0.839999973 : f32
    %281 = vector.broadcast %cst_104 : f32 to vector<2x64xf32>
    %282 = arith.addf %281, %280 : vector<2x64xf32>
    %283 = arith.mulf %282, %240 : vector<2x64xf32>
    %284 = vector.extract_strided_slice %269 {offsets = [0, 64], sizes = [2, 64], strides = [1, 1]} : vector<2x128xf32> to vector<2x64xf32>
    %285 = arith.addf %254, %284 : vector<2x64xf32>
    %cst_105 = arith.constant 6.000000e-01 : f32
    %286 = vector.broadcast %cst_105 : f32 to vector<2x64xf32>
    %287 = arith.mulf %286, %285 : vector<2x64xf32>
    %288 = arith.addf %283, %287 : vector<2x64xf32>
    %289 = vector.extract_strided_slice %288 {offsets = [0, 0], sizes = [1, 64], strides = [1, 1]} : vector<2x64xf32> to vector<1x64xf32>
    %290 = arith.index_cast %c5_i32 : i32 to index
    %c0_106 = arith.constant 0 : index
    %291 = vector.load %arg11[%290, %c0_106] : memref<8x64xf32, #tpu.memory_space<vmem>>, vector<1x64xf32>
    tpu.vector_store %arg11[%290, %c0_106], %289 {strides = array<i32>} : memref<8x64xf32, #tpu.memory_space<vmem>>, vector<1x64xf32>,
    %292 = vector.extract_strided_slice %282 {offsets = [0, 0], sizes = [1, 64], strides = [1, 1]} : vector<2x64xf32> to vector<1x64xf32>
    %293 = arith.index_cast %c5_i32 : i32 to index
    %c0_107 = arith.constant 0 : index
    %294 = vector.load %arg12[%293, %c0_107] : memref<8x64xf32, #tpu.memory_space<vmem>>, vector<1x64xf32>
    tpu.vector_store %arg12[%293, %c0_107], %292 {strides = array<i32>} : memref<8x64xf32, #tpu.memory_space<vmem>>, vector<1x64xf32>,
    %295 = vector.extract_strided_slice %267 {offsets = [0, 0], sizes = [1, 64], strides = [1, 1]} : vector<2x64xf32> to vector<1x64xf32>
    %296 = arith.index_cast %c5_i32 : i32 to index
    %c0_108 = arith.constant 0 : index
    %297 = vector.load %arg13[%296, %c0_108] : memref<8x64xf32, #tpu.memory_space<vmem>>, vector<1x64xf32>
    tpu.vector_store %arg13[%296, %c0_108], %295 {strides = array<i32>} : memref<8x64xf32, #tpu.memory_space<vmem>>, vector<1x64xf32>,
    %c6_i32 = arith.constant 6 : i32
    %298 = arith.index_cast %c6_i32 : i32 to index
    %c0_109 = arith.constant 0 : index
    %299 = vector.load %arg2[%298, %c0_109] : memref<8x64xf32, #tpu.memory_space<vmem>>, vector<1x64xf32>
    %300 = arith.index_cast %c6_i32 : i32 to index
    %c0_110 = arith.constant 0 : index
    %c0_111 = arith.constant 0 : index
    %301 = vector.load %arg1[%300, %c0_110, %c0_111] : memref<8x2x64xf32, #tpu.memory_space<vmem>>, vector<1x2x64xf32>
    %302 = vector.shape_cast %301 : vector<1x2x64xf32> to vector<2x64xf32>
    %303 = arith.truncf %288 : vector<2x64xf32> to vector<2x64xbf16>
    %cst_112 = arith.constant dense<0.000000e+00> : vector<2x64xf32>
    %304 = tpu.matmul %303, %3, %cst_112 {dimension_numbers = #tpu.dot_dimension_numbers<[1], [0], [0], [1], [0, 0, 1, 1], [], []>} : vector<2x64xbf16>, vector<64x64xbf16>, vector<2x64xf32> -> vector<2x64xf32>
    %305 = math.tanh %304 : vector<2x64xf32>
    %cst_113 = arith.constant 1.500000e+00 : f32
    %306 = vector.broadcast %cst_113 : f32 to vector<2x64xf32>
    %307 = arith.mulf %306, %305 : vector<2x64xf32>
    %cst_114 = arith.constant 2.500000e+00 : f32
    %308 = vector.broadcast %cst_114 : f32 to vector<2x64xf32>
    %309 = arith.addf %308, %307 : vector<2x64xf32>
    %310 = vector.broadcast %299 : vector<1x64xf32> to vector<2x64xf32>
    %311 = arith.mulf %310, %309 : vector<2x64xf32>
    %312 = vector.broadcast %5 : vector<1x64xf32> to vector<2x64xf32>
    %313 = arith.subf %311, %312 : vector<2x64xf32>
    %cst_115 = arith.constant 0.000000e+00 : f32
    %314 = vector.broadcast %cst_115 : f32 to vector<2x64xf32>
    %315 = arith.maximumf %313, %314 : vector<2x64xf32>
    %316 = arith.truncf %315 : vector<2x64xf32> to vector<2x64xbf16>
    %cst_116 = arith.constant dense<0.000000e+00> : vector<2x128xf32>
    %317 = tpu.matmul %316, %4, %cst_116 {dimension_numbers = #tpu.dot_dimension_numbers<[1], [0], [0], [1], [0, 0, 1, 1], [], []>} : vector<2x64xbf16>, vector<64x128xbf16>, vector<2x128xf32> -> vector<2x128xf32>
    %318 = vector.extract_strided_slice %317 {offsets = [0, 0], sizes = [2, 64], strides = [1, 1]} : vector<2x128xf32> to vector<2x64xf32>
    %319 = arith.addf %282, %318 : vector<2x64xf32>
    %320 = vector.broadcast %6 : vector<1x64xf32> to vector<2x64xf32>
    %321 = arith.addf %319, %320 : vector<2x64xf32>
    %cst_117 = arith.constant 2.000000e+00 : f32
    %322 = vector.broadcast %cst_117 : f32 to vector<2x64xf32>
    %323 = arith.mulf %322, %321 : vector<2x64xf32>
    %cst_118 = arith.constant 6.000000e-01 : f32
    %324 = vector.broadcast %cst_118 : f32 to vector<2x64xf32>
    %325 = arith.subf %323, %324 : vector<2x64xf32>
    %326 = math.tanh %325 : vector<2x64xf32>
    %cst_119 = arith.constant 1.500000e-01 : f32
    %327 = vector.broadcast %cst_119 : f32 to vector<2x64xf32>
    %328 = arith.mulf %327, %326 : vector<2x64xf32>
    %cst_120 = arith.constant 0.839999973 : f32
    %329 = vector.broadcast %cst_120 : f32 to vector<2x64xf32>
    %330 = arith.addf %329, %328 : vector<2x64xf32>
    %331 = arith.mulf %330, %288 : vector<2x64xf32>
    %332 = vector.extract_strided_slice %317 {offsets = [0, 64], sizes = [2, 64], strides = [1, 1]} : vector<2x128xf32> to vector<2x64xf32>
    %333 = arith.addf %302, %332 : vector<2x64xf32>
    %cst_121 = arith.constant 6.000000e-01 : f32
    %334 = vector.broadcast %cst_121 : f32 to vector<2x64xf32>
    %335 = arith.mulf %334, %333 : vector<2x64xf32>
    %336 = arith.addf %331, %335 : vector<2x64xf32>
    %337 = vector.extract_strided_slice %336 {offsets = [0, 0], sizes = [1, 64], strides = [1, 1]} : vector<2x64xf32> to vector<1x64xf32>
    %338 = arith.index_cast %c6_i32 : i32 to index
    %c0_122 = arith.constant 0 : index
    %339 = vector.load %arg11[%338, %c0_122] : memref<8x64xf32, #tpu.memory_space<vmem>>, vector<1x64xf32>
    tpu.vector_store %arg11[%338, %c0_122], %337 {strides = array<i32>} : memref<8x64xf32, #tpu.memory_space<vmem>>, vector<1x64xf32>,
    %340 = vector.extract_strided_slice %330 {offsets = [0, 0], sizes = [1, 64], strides = [1, 1]} : vector<2x64xf32> to vector<1x64xf32>
    %341 = arith.index_cast %c6_i32 : i32 to index
    %c0_123 = arith.constant 0 : index
    %342 = vector.load %arg12[%341, %c0_123] : memref<8x64xf32, #tpu.memory_space<vmem>>, vector<1x64xf32>
    tpu.vector_store %arg12[%341, %c0_123], %340 {strides = array<i32>} : memref<8x64xf32, #tpu.memory_space<vmem>>, vector<1x64xf32>,
    %343 = vector.extract_strided_slice %315 {offsets = [0, 0], sizes = [1, 64], strides = [1, 1]} : vector<2x64xf32> to vector<1x64xf32>
    %344 = arith.index_cast %c6_i32 : i32 to index
    %c0_124 = arith.constant 0 : index
    %345 = vector.load %arg13[%344, %c0_124] : memref<8x64xf32, #tpu.memory_space<vmem>>, vector<1x64xf32>
    tpu.vector_store %arg13[%344, %c0_124], %343 {strides = array<i32>} : memref<8x64xf32, #tpu.memory_space<vmem>>, vector<1x64xf32>,
    %c7_i32 = arith.constant 7 : i32
    %346 = arith.index_cast %c7_i32 : i32 to index
    %c0_125 = arith.constant 0 : index
    %347 = vector.load %arg2[%346, %c0_125] : memref<8x64xf32, #tpu.memory_space<vmem>>, vector<1x64xf32>
    %348 = arith.index_cast %c7_i32 : i32 to index
    %c0_126 = arith.constant 0 : index
    %c0_127 = arith.constant 0 : index
    %349 = vector.load %arg1[%348, %c0_126, %c0_127] : memref<8x2x64xf32, #tpu.memory_space<vmem>>, vector<1x2x64xf32>
    %350 = vector.shape_cast %349 : vector<1x2x64xf32> to vector<2x64xf32>
    %351 = arith.truncf %336 : vector<2x64xf32> to vector<2x64xbf16>
    %cst_128 = arith.constant dense<0.000000e+00> : vector<2x64xf32>
    %352 = tpu.matmul %351, %3, %cst_128 {dimension_numbers = #tpu.dot_dimension_numbers<[1], [0], [0], [1], [0, 0, 1, 1], [], []>} : vector<2x64xbf16>, vector<64x64xbf16>, vector<2x64xf32> -> vector<2x64xf32>
    %353 = math.tanh %352 : vector<2x64xf32>
    %cst_129 = arith.constant 1.500000e+00 : f32
    %354 = vector.broadcast %cst_129 : f32 to vector<2x64xf32>
    %355 = arith.mulf %354, %353 : vector<2x64xf32>
    %cst_130 = arith.constant 2.500000e+00 : f32
    %356 = vector.broadcast %cst_130 : f32 to vector<2x64xf32>
    %357 = arith.addf %356, %355 : vector<2x64xf32>
    %358 = vector.broadcast %347 : vector<1x64xf32> to vector<2x64xf32>
    %359 = arith.mulf %358, %357 : vector<2x64xf32>
    %360 = vector.broadcast %5 : vector<1x64xf32> to vector<2x64xf32>
    %361 = arith.subf %359, %360 : vector<2x64xf32>
    %cst_131 = arith.constant 0.000000e+00 : f32
    %362 = vector.broadcast %cst_131 : f32 to vector<2x64xf32>
    %363 = arith.maximumf %361, %362 : vector<2x64xf32>
    %364 = arith.truncf %363 : vector<2x64xf32> to vector<2x64xbf16>
    %cst_132 = arith.constant dense<0.000000e+00> : vector<2x128xf32>
    %365 = tpu.matmul %364, %4, %cst_132 {dimension_numbers = #tpu.dot_dimension_numbers<[1], [0], [0], [1], [0, 0, 1, 1], [], []>} : vector<2x64xbf16>, vector<64x128xbf16>, vector<2x128xf32> -> vector<2x128xf32>
    %366 = vector.extract_strided_slice %365 {offsets = [0, 0], sizes = [2, 64], strides = [1, 1]} : vector<2x128xf32> to vector<2x64xf32>
    %367 = arith.addf %330, %366 : vector<2x64xf32>
    %368 = vector.broadcast %6 : vector<1x64xf32> to vector<2x64xf32>
    %369 = arith.addf %367, %368 : vector<2x64xf32>
    %cst_133 = arith.constant 2.000000e+00 : f32
    %370 = vector.broadcast %cst_133 : f32 to vector<2x64xf32>
    %371 = arith.mulf %370, %369 : vector<2x64xf32>
    %cst_134 = arith.constant 6.000000e-01 : f32
    %372 = vector.broadcast %cst_134 : f32 to vector<2x64xf32>
    %373 = arith.subf %371, %372 : vector<2x64xf32>
    %374 = math.tanh %373 : vector<2x64xf32>
    %cst_135 = arith.constant 1.500000e-01 : f32
    %375 = vector.broadcast %cst_135 : f32 to vector<2x64xf32>
    %376 = arith.mulf %375, %374 : vector<2x64xf32>
    %cst_136 = arith.constant 0.839999973 : f32
    %377 = vector.broadcast %cst_136 : f32 to vector<2x64xf32>
    %378 = arith.addf %377, %376 : vector<2x64xf32>
    %379 = arith.mulf %378, %336 : vector<2x64xf32>
    %380 = vector.extract_strided_slice %365 {offsets = [0, 64], sizes = [2, 64], strides = [1, 1]} : vector<2x128xf32> to vector<2x64xf32>
    %381 = arith.addf %350, %380 : vector<2x64xf32>
    %cst_137 = arith.constant 6.000000e-01 : f32
    %382 = vector.broadcast %cst_137 : f32 to vector<2x64xf32>
    %383 = arith.mulf %382, %381 : vector<2x64xf32>
    %384 = arith.addf %379, %383 : vector<2x64xf32>
    %385 = vector.extract_strided_slice %384 {offsets = [0, 0], sizes = [1, 64], strides = [1, 1]} : vector<2x64xf32> to vector<1x64xf32>
    %386 = arith.index_cast %c7_i32 : i32 to index
    %c0_138 = arith.constant 0 : index
    %387 = vector.load %arg11[%386, %c0_138] : memref<8x64xf32, #tpu.memory_space<vmem>>, vector<1x64xf32>
    tpu.vector_store %arg11[%386, %c0_138], %385 {strides = array<i32>} : memref<8x64xf32, #tpu.memory_space<vmem>>, vector<1x64xf32>,
    %388 = vector.extract_strided_slice %378 {offsets = [0, 0], sizes = [1, 64], strides = [1, 1]} : vector<2x64xf32> to vector<1x64xf32>
    %389 = arith.index_cast %c7_i32 : i32 to index
    %c0_139 = arith.constant 0 : index
    %390 = vector.load %arg12[%389, %c0_139] : memref<8x64xf32, #tpu.memory_space<vmem>>, vector<1x64xf32>
    tpu.vector_store %arg12[%389, %c0_139], %388 {strides = array<i32>} : memref<8x64xf32, #tpu.memory_space<vmem>>, vector<1x64xf32>,
    %391 = vector.extract_strided_slice %363 {offsets = [0, 0], sizes = [1, 64], strides = [1, 1]} : vector<2x64xf32> to vector<1x64xf32>
    %392 = arith.index_cast %c7_i32 : i32 to index
    %c0_140 = arith.constant 0 : index
    %393 = vector.load %arg13[%392, %c0_140] : memref<8x64xf32, #tpu.memory_space<vmem>>, vector<1x64xf32>
    tpu.vector_store %arg13[%392, %c0_140], %391 {strides = array<i32>} : memref<8x64xf32, #tpu.memory_space<vmem>>, vector<1x64xf32>,
    %c8_i32 = arith.constant 8 : i32
    %c0_141 = arith.constant 0 : index
    %c0_142 = arith.constant 0 : index
    %394 = vector.load %arg15[%c0_141, %c0_142] : memref<2x64xf32, #tpu.memory_space<vmem>>, vector<2x64xf32>
    tpu.vector_store %arg15[%c0_141, %c0_142], %384 {strides = array<i32>} : memref<2x64xf32, #tpu.memory_space<vmem>>, vector<2x64xf32>,
    %c0_143 = arith.constant 0 : index
    %c0_144 = arith.constant 0 : index
    %395 = vector.load %arg16[%c0_143, %c0_144] : memref<2x64xf32, #tpu.memory_space<vmem>>, vector<2x64xf32>
    tpu.vector_store %arg16[%c0_143, %c0_144], %378 {strides = array<i32>} : memref<2x64xf32, #tpu.memory_space<vmem>>, vector<2x64xf32>,
    %c0_i32_145 = arith.constant 0 : i32
    %396 = arith.cmpi eq, %arg0, %c0_i32_145 : i32
    %397 = arith.extui %396 : i1 to i32
    %c0_i32_146 = arith.constant 0 : i32
    %398 = arith.cmpi ne, %397, %c0_i32_146 : i32
    scf.if %398 {
      %399 = vector.extract_strided_slice %363 {offsets = [0, 32], sizes = [2, 32], strides = [1, 1]} : vector<2x64xf32> to vector<2x32xf32>
      %c0_147 = arith.constant 0 : index
      %c0_148 = arith.constant 0 : index
      %400 = vector.load %arg9[%c0_147, %c0_148] : memref<32x2xf32, #tpu.memory_space<vmem>>, vector<32x2xf32>
      %cst_149 = arith.constant dense<0.000000e+00> : vector<2x2xf32>
      %401 = tpu.matmul %399, %400, %cst_149 {dimension_numbers = #tpu.dot_dimension_numbers<[1], [0], [0], [1], [0, 0, 1, 1], [], []>} : vector<2x32xf32>, vector<32x2xf32>, vector<2x2xf32> -> vector<2x2xf32>
      %c0_150 = arith.constant 0 : index
      %c0_151 = arith.constant 0 : index
      %402 = vector.load %arg10[%c0_150, %c0_151] : memref<1x2xf32, #tpu.memory_space<vmem>>, vector<1x2xf32>
      %403 = vector.broadcast %402 : vector<1x2xf32> to vector<2x2xf32>
      %404 = arith.addf %401, %403 : vector<2x2xf32>
      %c0_152 = arith.constant 0 : index
      %c0_153 = arith.constant 0 : index
      %405 = vector.load %arg14[%c0_152, %c0_153] : memref<2x2xf32, #tpu.memory_space<vmem>>, vector<2x2xf32>
      tpu.vector_store %arg14[%c0_152, %c0_153], %404 {strides = array<i32>} : memref<2x2xf32, #tpu.memory_space<vmem>>, vector<2x2xf32>,
    } else {
    }
    return
  }
  func.func @transform_0(%arg0: i32) -> (i32, i32, i32) {
    %c0_i32 = arith.constant 0 : i32
    %c0_i32_0 = arith.constant 0 : i32
    %c0_i32_1 = arith.constant 0 : i32
    return %arg0, %c0_i32, %c0_i32_0 : i32, i32, i32
  }
  func.func @transform_1(%arg0: i32) -> (i32, i32) {
    %c0_i32 = arith.constant 0 : i32
    %c0_i32_0 = arith.constant 0 : i32
    return %arg0, %c0_i32 : i32, i32
  }
  func.func @transform_2(%arg0: i32) -> (i32, i32) {
    %c0_i32 = arith.constant 0 : i32
    %c0_i32_0 = arith.constant 0 : i32
    %c0_i32_1 = arith.constant 0 : i32
    return %c0_i32, %c0_i32_0 : i32, i32
  }
  func.func @transform_3(%arg0: i32) -> (i32, i32) {
    %c0_i32 = arith.constant 0 : i32
    %c0_i32_0 = arith.constant 0 : i32
    %c0_i32_1 = arith.constant 0 : i32
    return %c0_i32, %c0_i32_0 : i32, i32
  }
  func.func @transform_4(%arg0: i32) -> (i32, i32) {
    %c0_i32 = arith.constant 0 : i32
    %c0_i32_0 = arith.constant 0 : i32
    %c0_i32_1 = arith.constant 0 : i32
    return %c0_i32, %c0_i32_0 : i32, i32
  }
  func.func @transform_5(%arg0: i32) -> (i32, i32) {
    %c0_i32 = arith.constant 0 : i32
    %c0_i32_0 = arith.constant 0 : i32
    %c0_i32_1 = arith.constant 0 : i32
    return %c0_i32, %c0_i32_0 : i32, i32
  }
  func.func @transform_6(%arg0: i32) -> (i32, i32) {
    %c0_i32 = arith.constant 0 : i32
    %c0_i32_0 = arith.constant 0 : i32
    %c0_i32_1 = arith.constant 0 : i32
    return %c0_i32, %c0_i32_0 : i32, i32
  }
  func.func @transform_7(%arg0: i32) -> (i32, i32) {
    %c0_i32 = arith.constant 0 : i32
    %c0_i32_0 = arith.constant 0 : i32
    %c0_i32_1 = arith.constant 0 : i32
    return %c0_i32, %c0_i32_0 : i32, i32
  }
  func.func @transform_8(%arg0: i32) -> (i32, i32) {
    %c0_i32 = arith.constant 0 : i32
    %c0_i32_0 = arith.constant 0 : i32
    %c0_i32_1 = arith.constant 0 : i32
    return %c0_i32, %c0_i32_0 : i32, i32
  }
  func.func @transform_9(%arg0: i32) -> (i32, i32) {
    %c0_i32 = arith.constant 0 : i32
    %c0_i32_0 = arith.constant 0 : i32
    %c0_i32_1 = arith.constant 0 : i32
    return %c0_i32, %c0_i32_0 : i32, i32
  }
  func.func @transform_10(%arg0: i32) -> (i32, i32) {
    %c0_i32 = arith.constant 0 : i32
    %c0_i32_0 = arith.constant 0 : i32
    return %arg0, %c0_i32 : i32, i32
  }
  func.func @transform_11(%arg0: i32) -> (i32, i32) {
    %c0_i32 = arith.constant 0 : i32
    %c0_i32_0 = arith.constant 0 : i32
    return %arg0, %c0_i32 : i32, i32
  }
  func.func @transform_12(%arg0: i32) -> (i32, i32) {
    %c0_i32 = arith.constant 0 : i32
    %c0_i32_0 = arith.constant 0 : i32
    return %arg0, %c0_i32 : i32, i32
  }
  func.func @transform_13(%arg0: i32) -> (i32, i32) {
    %c0_i32 = arith.constant 0 : i32
    %c0_i32_0 = arith.constant 0 : i32
    %c0_i32_1 = arith.constant 0 : i32
    return %c0_i32, %c0_i32_0 : i32, i32
  }
}

</mosaic_0001>

<bundles_post_ra>
// kernel: hpc_dv_forward.1
= control target key start
LH: loop header
LB: loop body
LE: loop exit
PB: predicated region body
PF: predicated region fallthrough
CT: control target
= control target key end

     0   :  { %vm46_vm0 = vcmask 517120   ;;  %s1239_s0 = inlined_call_operand.vmem [shape: f32[8,2,64], index: 0, kind: input, shape index: {}]   ;;  %s1240_s1 = inlined_call_operand.vmem [shape: f32[8,64], index: 1, kind: input, shape index: {}]   ;;  %s1241_s2 = inlined_call_operand.vmem [shape: f32[2,64], index: 2, kind: input, shape index: {}]   ;;  %s1242_s3 = inlined_call_operand.vmem [shape: f32[2,64], index: 3, kind: input, shape index: {}]   ;;  %s1243_s4 = inlined_call_operand.vmem [shape: bf16[64,64], index: 4, kind: input, shape index: {}]   ;;  %s1244_s5 = inlined_call_operand.vmem [shape: f32[1,64], index: 5, kind: input, shape index: {}]   ;;  %s1245_s6 = inlined_call_operand.vmem [shape: bf16[64,128], index: 6, kind: input, shape index: {}]   ;;  %s1246_s7 = inlined_call_operand.vmem [shape: f32[1,64], index: 7, kind: input, shape index: {}]   ;;  %s1247_s8 = inlined_call_operand.vmem [shape: f32[32,2], index: 8, kind: input, shape index: {}]   ;;  %s1248_s9 = inlined_call_operand.vmem [shape: f32[1,2], index: 9, kind: input, shape index: {}]   ;;  %s1249_s10 = inlined_call_operand.vmem [shape: f32[8,64], index: 10, kind: output, shape index: {0}]   ;;  %s1250_s11 = inlined_call_operand.vmem [shape: f32[8,64], index: 11, kind: output, shape index: {1}]   ;;  %s1251_s12 = inlined_call_operand.vmem [shape: f32[8,64], index: 12, kind: output, shape index: {2}]   ;;  %s1252_s13 = inlined_call_operand.hbm [shape: f32[2,2], index: 13, kind: output, shape index: {3}]  }
   0x1   :  { %v911_v0 = vld [vmem:[%s1243_s4 + $0x18] sm:$0xff]  ;;  %v916_v1 = vld [vmem:[%s1243_s4 + $0x10] sm:$0xff]  ;;  %v45_v2 = vld [vmem:[%s1241_s2] sm:$0x3] }
   0x2   :  { %105 = vmatpush.bf16.msra.mxu0 %v911_v0  ;;  %47 = vst.msk [vmem:[#allocation2] sm:$0x3] %vm46_vm0, %v45_v2  ;;  %198 = vmatpush.bf16.msra.mxu2 %v911_v0 }
   0x3   :  { %19 = vsyncpa [#allocation5], 0  ;;  %v928_v3 = vld [vmem:[%s1243_s4 + $0x8] sm:$0xff]  ;;  %v935_v4 = vld [vmem:[%s1243_s4] sm:$0xff]  ;;  %vm97_vm1 = vcmask 523264   ;;  %vm183_vm2 = vcmask 516096  }
   0x4   :  { %v960_v7 = vld [vmem:[%s1245_s6 + $0x18] sm:$0xff]  ;;  %v967_v8 = vld [vmem:[%s1245_s6 + $0x10] sm:$0xff]  ;;  %v974_v9 = vld [vmem:[%s1245_s6 + $0x8] sm:$0xff]  ;;  %s835_s14 = smov 64   ;;  %s836_s22 = smov 96   ;;  %vm638_vm3 = vcmask 261120  }
   0x5   :  { %156 = vmatpush.bf16.msra.mxu1 %v960_v7  ;;  %222 = vmatpush.bf16.msra.mxu3 %v960_v7  ;;  %v980_v10 = vld [vmem:[%s1245_s6] sm:$0xff]  ;;  %s837_s26 = smov [#allocation4]   ;;  %s676_s29 = sshll.u32 %s1252_s13, 4  ;;  %vm661_vm4 = vcmask 9216   ;;  %s677_s29 = int_to_ptr.hbm [resolvable:$true] %s676_s29 }
   0x6   :  { %106 = vmatpush.bf16.msra.mxu0 %v916_v1  ;;  %199 = vmatpush.bf16.msra.mxu2 %v916_v1  ;;  %v48_v11 = vld [vmem:[%s1242_s3] sm:$0x3]  ;;  %v726_v60 = vld [vmem:[%s1239_s0 + $0x2] sm:$0x3]  ;;  %s674_s27 = sshll.u32 %s837_s26, 4  ;;  %s675_s27 = int_to_ptr.vmem [resolvable:$true] %s674_s27 }
   0x7   :  { %49 = vst.msk [vmem:[#allocation3] sm:$0x3] %vm46_vm0, %v48_v11  ;;  %v766_v15 = vld [vmem:[%s1240_s1] ss:$0 sm:$0xff]  ;;  %v769_v44 = vld [vmem:[%s1240_s1 + $0x1] ss:$0 sm:$0xff] }
   0x8   :  { %v1003_v18 = vld [vmem:[%s1244_s5] ss:$0 sm:$0xff] }
   0x9   :  { %v937_v5 = vld [vmem:[#allocation2] sm:$0x3]  ;;  %157 = vmatpush.bf16.msra.mxu1 %v967_v8  ;;  %223 = vmatpush.bf16.msra.mxu3 %v967_v8 }
   0xa   :  { %107 = vmatpush.bf16.msra.mxu0 %v928_v3  ;;  %200 = vmatpush.bf16.msra.mxu2 %v928_v3  ;;  %v72_v6 = vpack.c.bf16 %v937_v5, %v937_v5  ;;  %v1018_v24 = vld [vmem:[%s1246_s7] ss:$0 sm:$0xff] }
   0xb   :  { %v71_v34 = vld [vmem:[%s1239_s0] sm:$0x3] }
   0xd   :  { %158 = vmatpush.bf16.msra.mxu1 %v974_v9  ;;  %224 = vmatpush.bf16.msra.mxu3 %v974_v9 }
   0xe   :  { %108 = vmatpush.bf16.msra.mxu0 %v935_v4  ;;  %201 = vmatpush.bf16.msra.mxu2 %v935_v4  ;;  %v69_v23 = vld [vmem:[#allocation3] sm:$0x3] }
  0x11   :  { %707 = vmatmul.msk.bf16.vlgmr.msra.gmra.mxu0 %vm97_vm1, %v72_v6  ;;  %159 = vmatpush.bf16.msra.mxu1 %v980_v10 }
  0x12   :  { %260 = vmatpush.bf16.msrb.mxu0 %v911_v0  ;;  %322 = vmatpush.bf16.msrb.mxu2 %v911_v0 }
  0x13   :  { %225 = vmatpush.bf16.msra.mxu3 %v980_v10 }
  0x15   :  { %284 = vmatpush.bf16.msrb.mxu1 %v960_v7 }
  0x16   :  { %261 = vmatpush.bf16.msrb.mxu0 %v916_v1  ;;  %323 = vmatpush.bf16.msrb.mxu2 %v916_v1 }
  0x17   :  { %346 = vmatpush.bf16.msrb.mxu3 %v960_v7 }
  0x19   :  { %285 = vmatpush.bf16.msrb.mxu1 %v967_v8 }
  0x1a   :  { %262 = vmatpush.bf16.msrb.mxu0 %v928_v3  ;;  %324 = vmatpush.bf16.msrb.mxu2 %v928_v3 }
  0x1b   :  { %347 = vmatpush.bf16.msrb.mxu3 %v967_v8 }
  0x1d   :  { %286 = vmatpush.bf16.msrb.mxu1 %v974_v9 }
  0x1e   :  { %263 = vmatpush.bf16.msrb.mxu0 %v935_v4  ;;  %325 = vmatpush.bf16.msrb.mxu2 %v935_v4 }
  0x1f   :  { %348 = vmatpush.bf16.msrb.mxu3 %v974_v9 }
  0x21   :  { %287 = vmatpush.bf16.msrb.mxu1 %v980_v10 }
  0x22   :  { %384 = vmatpush.bf16.msra.mxu0 %v911_v0 }
  0x23   :  { %349 = vmatpush.bf16.msrb.mxu3 %v980_v10 }
  0x26   :  { %385 = vmatpush.bf16.msra.mxu0 %v916_v1 }
  0x2a   :  { %386 = vmatpush.bf16.msra.mxu0 %v928_v3 }
  0x2e   :  { %387 = vmatpush.bf16.msra.mxu0 %v935_v4 }
  0x8e   :  { %v110_v12 = vpop.f32.mrf.mxu0 }
  0x8f   :  { %777 = vtanh.f32 %v110_v12 }
  0x95   :  { %v778_v13 = vpop.eup %777 }
  0x96   :  { %v115_v14 = vmul.f32 1.5, %v778_v13  ;;  %v112_v16 = vpop.f32.mrf.mxu0 }
  0x98   :  { %v116_v17 = vadd.f32 2.5, %v115_v14  ;;  %v770_v14 = vld [vmem:[%s1240_s1 + $0x2] ss:$0 sm:$0xff] }
  0x9a   :  { %v118_v19 = vmul.f32 %v766_v15, %v116_v17 }
  0x9c   :  { %v122_v20 = vsub.f32 %v118_v19, %v1003_v18 }
  0x9e   :  { %v123_v21 = vmax.f32 %v122_v20, 0.0 }
  0xa0   :  { %v124_v22 = vpack.c.bf16 %v123_v21, %v123_v21  ;;  %186 = vst.msk [vmem:[%s1251_s12] sm:$0x1] %vm183_vm2, %v123_v21 }
  0xa2   :  { %724 = vmatmul.msk.bf16.vlgmr.msra.gmra.mxu1 %vm97_vm1, %v124_v22 }
  0xa3   :  { %408 = vmatpush.bf16.msra.mxu1 %v960_v7 }
  0xa7   :  { %409 = vmatpush.bf16.msra.mxu1 %v967_v8 }
  0xab   :  { %410 = vmatpush.bf16.msra.mxu1 %v974_v9 }
  0xaf   :  { %411 = vmatpush.bf16.msra.mxu1 %v980_v10 }
 0x11f   :  { %v161_v25 = vpop.f32.mrf.mxu1 }
 0x120   :  { %v165_v26 = vadd.f32 %v161_v25, %v69_v23  ;;  %177 = vrot.lane.b32.xlu0 %v161_v25, %s835_s14 }
 0x122   :  { %v169_v27 = vadd.f32 %v1018_v24, %v165_v26 }
 0x124   :  { %v170_v28 = vmul.f32 2.0, %v169_v27 }
 0x126   :  { %v725_v29 = vadd.f32 -0.6, %v170_v28 }
 0x127   :  { %v163_v30 = vpop.f32.mrf.mxu1 }
 0x128   :  { %779 = vtanh.f32 %v725_v29 }
 0x12e   :  { %v780_v31 = vpop.eup %779 }
 0x12f   :  { %v173_v32 = vmul.f32 0.15, %v780_v31 }
 0x131   :  { %v174_v33 = vadd.f32 0.84, %v173_v32  ;;  %v730_v32 = vld [vmem:[%s1239_s0 + $0x4] sm:$0x3] }
 0x133   :  { %185 = vst.msk [vmem:[%s1250_s11] sm:$0x1] %vm183_vm2, %v174_v33  ;;  %v175_v37 = vmul.f32 %v174_v33, %v937_v5 }
 0x192   :  { %v178_v35 = vpop.permute.xlu0 %177 }
 0x193   :  { %v180_v36 = vadd.f32 %v178_v35, %v71_v34 }
 0x195   :  { %v181_v38 = vmul.f32 0.6, %v180_v36 }
 0x197   :  { %v182_v39 = vadd.f32 %v181_v38, %v175_v37 }
 0x199   :  { %184 = vst.msk [vmem:[%s1249_s10] sm:$0x1] %vm183_vm2, %v182_v39  ;;  %v190_v40 = vpack.c.bf16 %v182_v39, %v182_v39 }
 0x19b   :  { %727 = vmatmul.msk.bf16.vlgmr.msra.gmra.mxu2 %vm97_vm1, %v190_v40 }
 0x19c   :  { %446 = vmatpush.bf16.msra.mxu2 %v911_v0 }
 0x1a0   :  { %447 = vmatpush.bf16.msra.mxu2 %v916_v1 }
 0x1a4   :  { %448 = vmatpush.bf16.msra.mxu2 %v928_v3 }
 0x1a8   :  { %449 = vmatpush.bf16.msra.mxu2 %v935_v4 }
 0x21e   :  { %v203_v41 = vpop.f32.mrf.mxu2 }
 0x21f   :  { %781 = vtanh.f32 %v203_v41 }
 0x225   :  { %v782_v42 = vpop.eup %781 }
 0x226   :  { %v208_v43 = vmul.f32 1.5, %v782_v42  ;;  %v205_v45 = vpop.f32.mrf.mxu2  ;;  %v771_v42 = vld [vmem:[%s1240_s1 + $0x3] ss:$0 sm:$0xff] }
 0x228   :  { %v209_v46 = vadd.f32 2.5, %v208_v43 }
 0x22a   :  { %v211_v47 = vmul.f32 %v769_v44, %v209_v46 }
 0x22c   :  { %v212_v48 = vsub.f32 %v211_v47, %v1003_v18 }
 0x22e   :  { %v213_v49 = vmax.f32 %v212_v48, 0.0 }
 0x230   :  { %v214_v50 = vpack.c.bf16 %v213_v49, %v213_v49  ;;  %248 = vst.msk [vmem:[%s1251_s12 + $0x1] sm:$0x1] %vm183_vm2, %v213_v49 }
 0x232   :  { %728 = vmatmul.msk.bf16.vlgmr.msra.gmra.mxu3 %vm97_vm1, %v214_v50 }
 0x233   :  { %470 = vmatpush.bf16.msra.mxu3 %v960_v7 }
 0x237   :  { %471 = vmatpush.bf16.msra.mxu3 %v967_v8 }
 0x23b   :  { %472 = vmatpush.bf16.msra.mxu3 %v974_v9 }
 0x23f   :  { %473 = vmatpush.bf16.msra.mxu3 %v980_v10 }
 0x2b5   :  { %v227_v51 = vpop.f32.mrf.mxu3 }
 0x2b6   :  { %v231_v52 = vadd.f32 %v227_v51, %v174_v33  ;;  %240 = vrot.lane.b32.xlu0 %v227_v51, %s835_s14 }
 0x2b8   :  { %v232_v53 = vadd.f32 %v1018_v24, %v231_v52 }
 0x2ba   :  { %v233_v54 = vmul.f32 2.0, %v232_v53 }
 0x2bc   :  { %v729_v55 = vadd.f32 -0.6, %v233_v54 }
 0x2bd   :  { %v229_v56 = vpop.f32.mrf.mxu3 }
 0x2be   :  { %783 = vtanh.f32 %v729_v55 }
 0x2c4   :  { %v784_v57 = vpop.eup %783 }
 0x2c5   :  { %v236_v58 = vmul.f32 0.15, %v784_v57 }
 0x2c7   :  { %v237_v59 = vadd.f32 0.84, %v236_v58 }
 0x2c9   :  { %247 = vst.msk [vmem:[%s1250_s11 + $0x1] sm:$0x1] %vm183_vm2, %v237_v59  ;;  %v238_v63 = vmul.f32 %v237_v59, %v182_v39 }
 0x328   :  { %v241_v61 = vpop.permute.xlu0 %240 }
 0x329   :  { %v243_v62 = vadd.f32 %v726_v60, %v241_v61  ;;  %v772_v60 = vld [vmem:[%s1240_s1 + $0x4] ss:$0 sm:$0xff] }
 0x32b   :  { %v244_v2 = vmul.f32 0.6, %v243_v62 }
 0x32d   :  { %v245_v5 = vadd.f32 %v244_v2, %v238_v63 }
 0x32f   :  { %246 = vst.msk [vmem:[%s1249_s10 + $0x1] sm:$0x1] %vm183_vm2, %v245_v5  ;;  %v252_v6 = vpack.c.bf16 %v245_v5, %v245_v5 }
 0x331   :  { %731 = vmatmul.msk.bf16.vlgmr.msrb.gmra.mxu0 %vm97_vm1, %v252_v6 }
 0x332   :  { %508 = vmatpush.bf16.msrb.mxu0 %v911_v0 }
 0x336   :  { %509 = vmatpush.bf16.msrb.mxu0 %v916_v1 }
 0x33a   :  { %510 = vmatpush.bf16.msrb.mxu0 %v928_v3 }
 0x33e   :  { %511 = vmatpush.bf16.msrb.mxu0 %v935_v4 }
 0x3ae   :  { %v265_v11 = vpop.f32.mrf.mxu0 }
 0x3af   :  { %785 = vtanh.f32 %v265_v11 }
 0x3b5   :  { %v786_v12 = vpop.eup %785 }
 0x3b6   :  { %v270_v13 = vmul.f32 1.5, %v786_v12  ;;  %v267_v15 = vpop.f32.mrf.mxu0 }
 0x3b8   :  { %v271_v16 = vadd.f32 2.5, %v270_v13 }
 0x3ba   :  { %v273_v17 = vmul.f32 %v770_v14, %v271_v16 }
 0x3bc   :  { %v274_v19 = vsub.f32 %v273_v17, %v1003_v18 }
 0x3be   :  { %v275_v20 = vmax.f32 %v274_v19, 0.0 }
 0x3c0   :  { %310 = vst.msk [vmem:[%s1251_s12 + $0x2] sm:$0x1] %vm183_vm2, %v275_v20  ;;  %v276_v21 = vpack.c.bf16 %v275_v20, %v275_v20 }
 0x3c2   :  { %732 = vmatmul.msk.bf16.vlgmr.msrb.gmra.mxu1 %vm97_vm1, %v276_v21  ;;  %v738_v21 = vld [vmem:[%s1239_s0 + $0x8] sm:$0x3] }
 0x3c3   :  { %532 = vmatpush.bf16.msrb.mxu1 %v960_v7 }
 0x3c7   :  { %533 = vmatpush.bf16.msrb.mxu1 %v967_v8 }
 0x3cb   :  { %534 = vmatpush.bf16.msrb.mxu1 %v974_v9 }
 0x3cf   :  { %535 = vmatpush.bf16.msrb.mxu1 %v980_v10 }
 0x43f   :  { %v289_v22 = vpop.f32.mrf.mxu1 }
 0x440   :  { %v293_v23 = vadd.f32 %v289_v22, %v237_v59  ;;  %302 = vrot.lane.b32.xlu1 %v289_v22, %s835_s14 }
 0x442   :  { %v294_v25 = vadd.f32 %v1018_v24, %v293_v23 }
 0x444   :  { %v295_v26 = vmul.f32 2.0, %v294_v25 }
 0x446   :  { %v733_v27 = vadd.f32 -0.6, %v295_v26 }
 0x447   :  { %v291_v28 = vpop.f32.mrf.mxu1 }
 0x448   :  { %787 = vtanh.f32 %v733_v27 }
 0x44e   :  { %v788_v29 = vpop.eup %787 }
 0x44f   :  { %v298_v30 = vmul.f32 0.15, %v788_v29 }
 0x451   :  { %v299_v31 = vadd.f32 0.84, %v298_v30 }
 0x453   :  { %309 = vst.msk [vmem:[%s1250_s11 + $0x2] sm:$0x1] %vm183_vm2, %v299_v31  ;;  %v300_v35 = vmul.f32 %v299_v31, %v245_v5 }
 0x4b2   :  { %v303_v33 = vpop.permute.xlu1 %302 }
 0x4b3   :  { %v305_v34 = vadd.f32 %v730_v32, %v303_v33  ;;  %v773_v32 = vld [vmem:[%s1240_s1 + $0x5] ss:$0 sm:$0xff] }
 0x4b5   :  { %v306_v36 = vmul.f32 0.6, %v305_v34 }
 0x4b7   :  { %v307_v37 = vadd.f32 %v306_v36, %v300_v35 }
 0x4b9   :  { %308 = vst.msk [vmem:[%s1249_s10 + $0x2] sm:$0x1] %vm183_vm2, %v307_v37  ;;  %v314_v38 = vpack.c.bf16 %v307_v37, %v307_v37 }
 0x4bb   :  { %735 = vmatmul.msk.bf16.vlgmr.msrb.gmra.mxu2 %vm97_vm1, %v314_v38 }
 0x4bc   :  { %570 = vmatpush.bf16.msrb.mxu2 %v911_v0 }
 0x4c0   :  { %571 = vmatpush.bf16.msrb.mxu2 %v916_v1 }
 0x4c4   :  { %572 = vmatpush.bf16.msrb.mxu2 %v928_v3 }
 0x4c8   :  { %573 = vmatpush.bf16.msrb.mxu2 %v935_v4 }
 0x53e   :  { %v327_v39 = vpop.f32.mrf.mxu2 }
 0x53f   :  { %789 = vtanh.f32 %v327_v39 }
 0x545   :  { %v790_v40 = vpop.eup %789 }
 0x546   :  { %v332_v41 = vmul.f32 1.5, %v790_v40  ;;  %v329_v43 = vpop.f32.mrf.mxu2 }
 0x548   :  { %v333_v44 = vadd.f32 2.5, %v332_v41 }
 0x54a   :  { %v335_v45 = vmul.f32 %v771_v42, %v333_v44 }
 0x54c   :  { %v336_v46 = vsub.f32 %v335_v45, %v1003_v18 }
 0x54e   :  { %v337_v0 = vmax.f32 %v336_v46, 0.0 }
 0x550   :  { %372 = vst.msk [vmem:[%s1251_s12 + $0x3] sm:$0x1] %vm183_vm2, %v337_v0  ;;  %v338_v1 = vpack.c.bf16 %v337_v0, %v337_v0 }
 0x552   :  { %736 = vmatmul.msk.bf16.vlgmr.msrb.gmra.mxu3 %vm97_vm1, %v338_v1  ;;  %v742_v1 = vld [vmem:[%s1239_s0 + $0xa] sm:$0x3] }
 0x553   :  { %594 = vmatpush.bf16.msrb.mxu3 %v960_v7  ;;  %v734_v7 = vld [vmem:[%s1239_s0 + $0x6] sm:$0x3] }
 0x557   :  { %595 = vmatpush.bf16.msrb.mxu3 %v967_v8 }
 0x55b   :  { %596 = vmatpush.bf16.msrb.mxu3 %v974_v9 }
 0x55f   :  { %597 = vmatpush.bf16.msrb.mxu3 %v980_v10 }
 0x5d5   :  { %v351_v3 = vpop.f32.mrf.mxu3 }
 0x5d6   :  { %v355_v4 = vadd.f32 %v351_v3, %v299_v31  ;;  %364 = vrot.lane.b32.xlu1 %v351_v3, %s835_s14 }
 0x5d8   :  { %v356_v47 = vadd.f32 %v1018_v24, %v355_v4 }
 0x5da   :  { %v357_v48 = vmul.f32 2.0, %v356_v47 }
 0x5dc   :  { %v737_v49 = vadd.f32 -0.6, %v357_v48 }
 0x5dd   :  { %v353_v50 = vpop.f32.mrf.mxu3 }
 0x5de   :  { %791 = vtanh.f32 %v737_v49 }
 0x5e4   :  { %v792_v51 = vpop.eup %791 }
 0x5e5   :  { %v360_v52 = vmul.f32 0.15, %v792_v51 }
 0x5e7   :  { %v361_v53 = vadd.f32 0.84, %v360_v52 }
 0x5e9   :  { %371 = vst.msk [vmem:[%s1250_s11 + $0x3] sm:$0x1] %vm183_vm2, %v361_v53  ;;  %v362_v10 = vmul.f32 %v361_v53, %v307_v37 }
 0x648   :  { %v365_v8 = vpop.permute.xlu1 %364 }
 0x649   :  { %v367_v9 = vadd.f32 %v734_v7, %v365_v8  ;;  %v774_v7 = vld [vmem:[%s1240_s1 + $0x6] ss:$0 sm:$0xff] }
 0x64b   :  { %v368_v54 = vmul.f32 0.6, %v367_v9 }
 0x64d   :  { %v369_v55 = vadd.f32 %v368_v54, %v362_v10 }
 0x64f   :  { %370 = vst.msk [vmem:[%s1249_s10 + $0x3] sm:$0x1] %vm183_vm2, %v369_v55  ;;  %v376_v56 = vpack.c.bf16 %v369_v55, %v369_v55 }
 0x651   :  { %739 = vmatmul.msk.bf16.vlgmr.msra.gmra.mxu0 %vm97_vm1, %v376_v56 }
 0x6ce   :  { %v389_v57 = vpop.f32.mrf.mxu0 }
 0x6cf   :  { %793 = vtanh.f32 %v389_v57 }
 0x6d5   :  { %v794_v58 = vpop.eup %793 }
 0x6d6   :  { %v394_v59 = vmul.f32 1.5, %v794_v58  ;;  %v391_v61 = vpop.f32.mrf.mxu0 }
 0x6d8   :  { %v395_v62 = vadd.f32 2.5, %v394_v59 }
 0x6da   :  { %v397_v63 = vmul.f32 %v772_v60, %v395_v62 }
 0x6dc   :  { %v398_v2 = vsub.f32 %v397_v63, %v1003_v18 }
 0x6de   :  { %v399_v5 = vmax.f32 %v398_v2, 0.0 }
 0x6e0   :  { %v400_v6 = vpack.c.bf16 %v399_v5, %v399_v5  ;;  %434 = vst.msk [vmem:[%s1251_s12 + $0x4] sm:$0x1] %vm183_vm2, %v399_v5 }
 0x6e2   :  { %740 = vmatmul.msk.bf16.vlgmr.msra.gmra.mxu1 %vm97_vm1, %v400_v6  ;;  %v746_v6 = vld [vmem:[%s1239_s0 + $0xc] sm:$0x3] }
 0x75f   :  { %v413_v11 = vpop.f32.mrf.mxu1 }
 0x760   :  { %v417_v12 = vadd.f32 %v413_v11, %v361_v53  ;;  %426 = vrot.lane.b32.xlu2 %v413_v11, %s835_s14 }
 0x762   :  { %v418_v13 = vadd.f32 %v1018_v24, %v417_v12 }
 0x764   :  { %v419_v14 = vmul.f32 2.0, %v418_v13 }
 0x766   :  { %v741_v15 = vadd.f32 -0.6, %v419_v14 }
 0x767   :  { %v415_v16 = vpop.f32.mrf.mxu1 }
 0x768   :  { %795 = vtanh.f32 %v741_v15 }
 0x76e   :  { %v796_v17 = vpop.eup %795 }
 0x76f   :  { %v422_v19 = vmul.f32 0.15, %v796_v17  ;;  %v630_v17 = vld [vmem:[%s1247_s8 + $0x18] sm:$0xff] }
 0x770   :  { %653 = vmatpush.msra.mxu0 %v630_v17 }
 0x771   :  { %v423_v20 = vadd.f32 0.84, %v422_v19  ;;  %v629_v19 = vld [vmem:[%s1247_s8 + $0x10] sm:$0xff] }
 0x772   :  { %654 = vmatpush.msra.mxu0 %v629_v19 }
 0x773   :  { %433 = vst.msk [vmem:[%s1250_s11 + $0x4] sm:$0x1] %vm183_vm2, %v423_v20  ;;  %v424_v25 = vmul.f32 %v423_v20, %v369_v55 }
 0x7ba   :  { %v427_v22 = vpop.permute.xlu2 %426 }
 0x7bb   :  { %v429_v23 = vadd.f32 %v738_v21, %v427_v22  ;;  %v627_v21 = vld [vmem:[%s1247_s8] sm:$0xff] }
 0x7bd   :  { %v430_v26 = vmul.f32 0.6, %v429_v23 }
 0x7bf   :  { %v431_v27 = vadd.f32 %v430_v26, %v424_v25  ;;  %v775_v26 = vld [vmem:[%s1240_s1 + $0x7] ss:$0 sm:$0xff] }
 0x7c1   :  { %432 = vst.msk [vmem:[%s1249_s10 + $0x4] sm:$0x1] %vm183_vm2, %v431_v27  ;;  %v438_v28 = vpack.c.bf16 %v431_v27, %v431_v27 }
 0x7c3   :  { %743 = vmatmul.msk.bf16.vlgmr.msra.gmra.mxu2 %vm97_vm1, %v438_v28 }
 0x846   :  { %v451_v29 = vpop.f32.mrf.mxu2 }
 0x847   :  { %797 = vtanh.f32 %v451_v29 }
 0x84d   :  { %v798_v30 = vpop.eup %797 }
 0x84e   :  { %v456_v31 = vmul.f32 1.5, %v798_v30  ;;  %v453_v33 = vpop.f32.mrf.mxu2 }
 0x850   :  { %v457_v34 = vadd.f32 2.5, %v456_v31 }
 0x852   :  { %v459_v35 = vmul.f32 %v773_v32, %v457_v34 }
 0x854   :  { %v460_v36 = vsub.f32 %v459_v35, %v1003_v18 }
 0x856   :  { %v461_v37 = vmax.f32 %v460_v36, 0.0 }
 0x858   :  { %v462_v38 = vpack.c.bf16 %v461_v37, %v461_v37  ;;  %496 = vst.msk [vmem:[%s1251_s12 + $0x5] sm:$0x1] %vm183_vm2, %v461_v37 }
 0x85a   :  { %744 = vmatmul.msk.bf16.vlgmr.msra.gmra.mxu3 %vm97_vm1, %v462_v38 }
 0x8dd   :  { %v475_v39 = vpop.f32.mrf.mxu3 }
 0x8de   :  { %v479_v40 = vadd.f32 %v475_v39, %v423_v20  ;;  %488 = vrot.lane.b32.xlu2 %v475_v39, %s835_s14  ;;  %v628_v20 = vld [vmem:[%s1247_s8 + $0x8] sm:$0xff] }
 0x8df   :  { %655 = vmatpush.msra.mxu0 %v628_v20 }
 0x8e0   :  { %v480_v41 = vadd.f32 %v1018_v24, %v479_v40 }
 0x8e1   :  { %656 = vmatpush.msra.mxu0 %v627_v21 }
 0x8e2   :  { %v481_v42 = vmul.f32 2.0, %v480_v41 }
 0x8e4   :  { %v745_v43 = vadd.f32 -0.6, %v481_v42  ;;  %v750_v42 = vld [vmem:[%s1239_s0 + $0xe] sm:$0x3] }
 0x8e5   :  { %v477_v44 = vpop.f32.mrf.mxu3 }
 0x8e6   :  { %799 = vtanh.f32 %v745_v43 }
 0x8ec   :  { %v800_v45 = vpop.eup %799 }
 0x8ed   :  { %v484_v46 = vmul.f32 0.15, %v800_v45 }
 0x8ef   :  { %v485_v0 = vadd.f32 0.84, %v484_v46 }
 0x8f1   :  { %495 = vst.msk [vmem:[%s1250_s11 + $0x5] sm:$0x1] %vm183_vm2, %v485_v0  ;;  %v486_v47 = vmul.f32 %v485_v0, %v431_v27 }
 0x938   :  { %v489_v3 = vpop.permute.xlu2 %488 }
 0x939   :  { %v491_v4 = vadd.f32 %v742_v1, %v489_v3 }
 0x93b   :  { %v492_v48 = vmul.f32 0.6, %v491_v4 }
 0x93d   :  { %v493_v49 = vadd.f32 %v492_v48, %v486_v47 }
 0x93f   :  { %494 = vst.msk [vmem:[%s1249_s10 + $0x5] sm:$0x1] %vm183_vm2, %v493_v49  ;;  %v500_v50 = vpack.c.bf16 %v493_v49, %v493_v49 }
 0x941   :  { %747 = vmatmul.msk.bf16.vlgmr.msrb.gmra.mxu0 %vm97_vm1, %v500_v50 }
 0x9be   :  { %v513_v51 = vpop.f32.mrf.mxu0 }
 0x9bf   :  { %801 = vtanh.f32 %v513_v51 }
 0x9c5   :  { %v802_v52 = vpop.eup %801 }
 0x9c6   :  { %v518_v53 = vmul.f32 1.5, %v802_v52  ;;  %v515_v8 = vpop.f32.mrf.mxu0 }
 0x9c8   :  { %v519_v9 = vadd.f32 2.5, %v518_v53 }
 0x9ca   :  { %v521_v10 = vmul.f32 %v774_v7, %v519_v9 }
 0x9cc   :  { %v522_v54 = vsub.f32 %v521_v10, %v1003_v18 }
 0x9ce   :  { %v523_v55 = vmax.f32 %v522_v54, 0.0 }
 0x9d0   :  { %v524_v56 = vpack.c.bf16 %v523_v55, %v523_v55  ;;  %558 = vst.msk [vmem:[%s1251_s12 + $0x6] sm:$0x1] %vm183_vm2, %v523_v55 }
 0x9d2   :  { %748 = vmatmul.msk.bf16.vlgmr.msrb.gmra.mxu1 %vm97_vm1, %v524_v56 }
 0xa4f   :  { %v537_v57 = vpop.f32.mrf.mxu1 }
 0xa50   :  { %v541_v58 = vadd.f32 %v537_v57, %v485_v0  ;;  %550 = vrot.lane.b32.xlu0 %v537_v57, %s835_s14  ;;  %v776_v0 = vld [vmem:[%s1248_s9] ss:$0 sm:$0xff] }
 0xa52   :  { %v542_v59 = vadd.f32 %v1018_v24, %v541_v58 }
 0xa54   :  { %v543_v60 = vmul.f32 2.0, %v542_v59 }
 0xa56   :  { %v749_v61 = vadd.f32 -0.6, %v543_v60 }
 0xa57   :  { %v539_v62 = vpop.f32.mrf.mxu1 }
 0xa58   :  { %803 = vtanh.f32 %v749_v61 }
 0xa5e   :  { %v804_v63 = vpop.eup %803 }
 0xa5f   :  { %v546_v2 = vmul.f32 0.15, %v804_v63 }
 0xa61   :  { %v547_v5 = vadd.f32 0.84, %v546_v2 }
 0xa63   :  { %557 = vst.msk [vmem:[%s1250_s11 + $0x6] sm:$0x1] %vm183_vm2, %v547_v5  ;;  %v548_v13 = vmul.f32 %v547_v5, %v493_v49 }
 0xac2   :  { %v551_v11 = vpop.permute.xlu0 %550 }
 0xac3   :  { %v553_v12 = vadd.f32 %v746_v6, %v551_v11 }
 0xac5   :  { %v554_v14 = vmul.f32 0.6, %v553_v12 }
 0xac7   :  { %v555_v15 = vadd.f32 %v554_v14, %v548_v13 }
 0xac9   :  { %556 = vst.msk [vmem:[%s1249_s10 + $0x6] sm:$0x1] %vm183_vm2, %v555_v15  ;;  %v562_v16 = vpack.c.bf16 %v555_v15, %v555_v15 }
 0xacb   :  { %751 = vmatmul.msk.bf16.vlgmr.msrb.gmra.mxu2 %vm97_vm1, %v562_v16 }
 0xb4e   :  { %v575_v22 = vpop.f32.mrf.mxu2 }
 0xb4f   :  { %805 = vtanh.f32 %v575_v22 }
 0xb55   :  { %v806_v23 = vpop.eup %805 }
 0xb56   :  { %v580_v25 = vmul.f32 1.5, %v806_v23  ;;  %v577_v27 = vpop.f32.mrf.mxu2 }
 0xb58   :  { %v581_v28 = vadd.f32 2.5, %v580_v25 }
 0xb5a   :  { %v583_v29 = vmul.f32 %v775_v26, %v581_v28 }
 0xb5c   :  { %v584_v30 = vsub.f32 %v583_v29, %v1003_v18 }
 0xb5e   :  { %v585_v31 = vmax.f32 %v584_v30, 0.0 }
 0xb60   :  { %636 = vrot.lane.b32.xlu1 %v585_v31, %s836_s22  ;;  %v586_v32 = vpack.c.bf16 %v585_v31, %v585_v31  ;;  %620 = vst.msk [vmem:[%s1251_s12 + $0x7] sm:$0x1] %vm183_vm2, %v585_v31 }
 0xb62   :  { %752 = vmatmul.msk.bf16.vlgmr.msrb.gmra.mxu3 %vm97_vm1, %v586_v32 }
 0xbd2   :  { %v637_v33 = vpop.permute.xlu1 %636 }
 0xbd3   :  { %754 = vmatmul.msk.f32.vlgmr.msra.gmra.mxu0 %vm638_vm3, %v637_v33 }
 0xbe5   :  { %v599_v34 = vpop.f32.mrf.mxu3 }
 0xbe6   :  { %v603_v35 = vadd.f32 %v599_v34, %v547_v5  ;;  %612 = vrot.lane.b32.xlu2 %v599_v34, %s835_s14 }
 0xbe8   :  { %v604_v18 = vadd.f32 %v1018_v24, %v603_v35 }
 0xbea   :  { %v605_v36 = vmul.f32 2.0, %v604_v18 }
 0xbec   :  { %v753_v37 = vadd.f32 -0.6, %v605_v36 }
 0xbed   :  { %v601_v38 = vpop.f32.mrf.mxu3 }
 0xbee   :  { %807 = vtanh.f32 %v753_v37 }
 0xbf4   :  { %v808_v39 = vpop.eup %807 }
 0xbf5   :  { %v608_v40 = vmul.f32 0.15, %v808_v39 }
 0xbf7   :  { %v609_v41 = vadd.f32 0.84, %v608_v40 }
 0xbf9   :  { %619 = vst.msk [vmem:[%s1250_s11 + $0x7] sm:$0x1] %vm183_vm2, %v609_v41  ;;  %v610_v44 = vmul.f32 %v609_v41, %v555_v15 }
 0xbfa   :  { %623 = vst.msk [vmem:[#allocation3] sm:$0x3] %vm46_vm0, %v609_v41 }
 0xc40   :  { %v613_v43 = vpop.permute.xlu2 %612 }
 0xc41   :  { %v615_v24 = vadd.f32 %v750_v42, %v613_v43 }
 0xc43   :  { %v616_v45 = vmul.f32 0.6, %v615_v24 }
 0xc45   :  { %v617_v46 = vadd.f32 %v616_v45, %v610_v44 }
 0xc47   :  { %618 = vst.msk [vmem:[%s1249_s10 + $0x7] sm:$0x1] %vm183_vm2, %v617_v46 }
 0xc48   :  { %622 = vst.msk [vmem:[#allocation2] sm:$0x3] %vm46_vm0, %v617_v46 }
 0xc50   :  { %v658_v1 = vpop.f32.mrf.mxu0 }
 0xc51   :  { %v659_v3 = vadd.f32 %v776_v0, %v658_v1 }
 0xc53   :  { %662 = vst.msk [vmem:[#allocation4] sm:$0x3] %vm661_vm4, %v659_v3 }
 0xc54   :  { %679 = dma.vmem_to_hbm [thread:$0]  %s675_s27, 32, %s677_s29, [#allocation5]  }
 0xc55   :  { %833 = dma.done.wait [#allocation5], 32  }
 0xc56   :  { %834 = vsyncadd [#allocation5], 4294967264 }
 0xc57   :  { %690 = vsyncpa [#allocation5], 1 }

</bundles_post_ra>
